<compile_context>
chip_gen: v7x
topology: tpu7x:2x2x1
jax: 0.10.0
libtpu: 0.0.40
codegen_flags: <defaults>
</compile_context>

<pallas_src>
import functools
import math

import jax
import jax.numpy as jnp
from jax.experimental import pallas as pl
from jax.experimental.pallas import tpu as pltpu


_LN_EPS = 1e-5
_NEG_INF = -1e9  # additive key-padding mask (documented divergence: a fully
                 # padded key row yields uniform attention, not NaN)

# --- small compat shims ------------------------------------------------------
_CompilerParams = getattr(pltpu, "CompilerParams",
                          getattr(pltpu, "TPUCompilerParams", None))
_SQUEEZED = pl.Squeezed() if hasattr(pl, "Squeezed") else None
_reciprocal = (pl.reciprocal if hasattr(pl, "reciprocal")
               else (lambda x, approx=False: 1.0 / x))


def _probe_single_buffering():
    """Check end-to-end (construct + lower + compile) whether
    pipeline_mode=pl.Buffered(1) is supported, so resident weights can skip
    double buffering. Falls back to default buffering on any failure."""
    if not hasattr(pl, "Buffered"):
        return False
    try:
        def _copy(x_ref, o_ref):
            o_ref[...] = x_ref[...]

        fn = pl.pallas_call(
            _copy,
            out_shape=jax.ShapeDtypeStruct((16, 128), jnp.float32),
            grid=(2,),
            in_specs=[pl.BlockSpec((8, 128), lambda i: (0, 0),
                                   pipeline_mode=pl.Buffered(1))],
            out_specs=pl.BlockSpec((8, 128), lambda i: (i, 0)))
        jax.jit(fn).lower(
            jax.ShapeDtypeStruct((8, 128), jnp.float32)).compile()
        return True
    except Exception:   # any failure => use default double buffering
        return False


_SINGLE_BUFFER_WEIGHTS = _probe_single_buffering()


# ---------------------------------------------------------------------------
# In-kernel helpers
# ---------------------------------------------------------------------------

def _layernorm(h, gamma, beta, eps):
    # Two-pass mean / centered variance (closer to PyTorch LN numerics than
    # E[x^2]-E[x]^2); all statistics in f32.
    inv_d = 1.0 / h.shape[-1]
    mean = jnp.sum(h, axis=-1, keepdims=True) * inv_d
    c = h - mean
    var = jnp.sum(c * c, axis=-1, keepdims=True) * inv_d
    return c * jax.lax.rsqrt(var + eps) * gamma + beta


# ---------------------------------------------------------------------------
# Kernels
# ---------------------------------------------------------------------------

def _attn_block_kernel(x_ref, m_ref, w_qkv_ref, b_qkv_ref, wo_ref, bo_ref,
                       g_ref, beta_ref, o_ref, *, heads, dim, eps):
    """Fused post-norm attention block for one batch element:
         out = LayerNorm(x + MHA(x, key_padding_mask) @ Wo + bo)
    bf16 matmul operands, f32 accumulation; softmax/LN/residual in f32."""
    n = x_ref.shape[0]
    dh = dim // heads
    scale = 1.0 / math.sqrt(dh)

    x = x_ref[...]                                               # (N, D) f32
    qkv = jnp.dot(x.astype(jnp.bfloat16), w_qkv_ref[...],
                  preferred_element_type=jnp.float32) + b_qkv_ref[...]

    # Hoist the (1, N) -> (N, N) mask broadcast out of the unrolled head loop.
    mask = jnp.broadcast_to(m_ref[...], (n, n))

    # Contract q's dh axis against k's dh axis directly (no k.T materialized).
    qk_dims = (((1,), (1,)), ((), ()))
    outs = []
    # TODO(synk): flash-style (q_tile, kv_tile) blocking with online softmax
    # before scaling N (dense (N, N) scores per head are fine at these sizes).
    # TODO(synk): pack several heads per MXU pass / pad dh to 128 when
    # dim // heads < 128 to keep the 256-wide MXU fed on v6e/v7x.
    for hd in range(heads):
        lo = hd * dh
        q = qkv[:, lo:lo + dh].astype(jnp.bfloat16)
        k = qkv[:, dim + lo:dim + lo + dh].astype(jnp.bfloat16)
        v = qkv[:, 2 * dim + lo:2 * dim + lo + dh].astype(jnp.bfloat16)
        s = jax.lax.dot_general(q, k, qk_dims,
                                preferred_element_type=jnp.float32)
        s = s * scale + mask
        s = s - jnp.max(s, axis=-1, keepdims=True)
        p = jnp.exp(s)
        p = p * _reciprocal(jnp.sum(p, axis=-1, keepdims=True), approx=True)
        outs.append(jnp.dot(p.astype(jnp.bfloat16), v,
                            preferred_element_type=jnp.float32))
    attn = jnp.concatenate(outs, axis=-1)     # single lane-dense (N, D) value

    proj = jnp.dot(attn.astype(jnp.bfloat16), wo_ref[...],
                   preferred_element_type=jnp.float32) + bo_ref[...]
    o_ref[...] = _layernorm(x + proj, g_ref[...], beta_ref[...], eps)


def _ffn_res_ln_kernel(x_ref, w1_ref, b1_ref, w2_ref, b2_ref, g_ref, beta_ref,
                       o_ref, *, eps):
    # out = LayerNorm(x + relu(x @ W1 + b1) @ W2 + b2)
    # TODO(synk): tile the ff dimension with an "arbitrary" grid axis +
    # accumulator scratch once D is large enough that resident W1/W2 no
    # longer fit v7x's 64 MiB VMEM.
    x = x_ref[...]
    h = jnp.dot(x.astype(jnp.bfloat16), w1_ref[...],
                preferred_element_type=jnp.float32) + b1_ref[...]
    h = jnp.maximum(h, 0.0)                                      # f32 ReLU
    y = jnp.dot(h.astype(jnp.bfloat16), w2_ref[...],
                preferred_element_type=jnp.float32) + b2_ref[...]
    o_ref[...] = _layernorm(x + y, g_ref[...], beta_ref[...], eps)


def _ln_kernel(x_ref, g_ref, b_ref, o_ref, *, eps):
    o_ref[...] = _layernorm(x_ref[...], g_ref[...], b_ref[...], eps)


# ---------------------------------------------------------------------------
# pallas_call wrappers
# ---------------------------------------------------------------------------

def _nbytes(a):
    return a.size * a.dtype.itemsize


def _vmem_limit(need_bytes):
    # Explicit scoped-VMEM request sized to the actual footprint (default is
    # only 16/32 MiB); capped below v7x's 64 MiB physical VMEM.
    return int(min(max(2 * need_bytes + (4 << 20), 32 << 20), 48 << 20))


def _const_spec(shape):
    """BlockSpec for a fully resident (constant index_map) weight / bias.
    Single-buffered when supported: double-buffering a block whose index
    never changes is pure VMEM waste."""
    ndim = len(shape)
    index_map = lambda *_: (0,) * ndim
    if _SINGLE_BUFFER_WEIGHTS:
        return pl.BlockSpec(shape, index_map, pipeline_mode=pl.Buffered(1))
    return pl.BlockSpec(shape, index_map)


def _m_tile(m, max_tile=512):
    """Row-tile: MXU/lane aligned (prefer multiples of 256, then 128, then 8)
    dividing M, capped by max_tile, preferring an even (>=2) number of grid
    steps so both v7x TensorCores get balanced work."""
    if m <= 8 or m % 8 != 0:
        return m
    tm = m
    for align in (256, 128, 8):
        t = min(max_tile, m)
        t -= t % align
        while t >= align and m % t != 0:
            t -= align
        if t >= align:
            tm = t
            break
    steps = m // tm
    if steps % 2 == 1 and tm % 16 == 0 and m % (tm // 2) == 0:
        tm //= 2          # even step count for the 2 TCs on v7x
    return tm


def _row_tiled_call(kernel, row_args, const_args, out_cols, *, max_tile=512):
    """Run `kernel(row_refs..., const_refs..., out_ref)` tiled over rows."""
    m = row_args[0].shape[0]
    tm = _m_tile(m, max_tile)
    grid = (m // tm,)
    in_specs = [pl.BlockSpec((tm, a.shape[1]), lambda i: (i, 0))
                for a in row_args]
    in_specs += [_const_spec(a.shape) for a in const_args]
    const_bufs = 1 if _SINGLE_BUFFER_WEIGHTS else 2
    need = (2 * (sum(tm * a.shape[1] * a.dtype.itemsize for a in row_args)
                 + tm * out_cols * 4)
            + const_bufs * sum(_nbytes(a) for a in const_args))
    return pl.pallas_call(
        kernel,
        out_shape=jax.ShapeDtypeStruct((m, out_cols), jnp.float32),
        grid=grid,
        in_specs=in_specs,
        out_specs=pl.BlockSpec((tm, out_cols), lambda i: (i, 0)),
        compiler_params=_CompilerParams(
            dimension_semantics=("parallel",),
            vmem_limit_bytes=_vmem_limit(need)),
    )(*row_args, *const_args)


def _attention_block(x_bnd, mask_add, p, *, heads, eps):
    """Fused QKV + MHA + out-proj + residual + LN, one grid step per batch."""
    B, N, D = x_bnd.shape
    consts = [p["w_qkv"], p["b_qkv"], p["wo"], p["bo"],
              p["ln1_g"], p["ln1_b"]]
    const_bufs = 1 if _SINGLE_BUFFER_WEIGHTS else 2
    need = (2 * (2 * N * D * 4 + N * 4)                  # x + out blocks, mask
            + const_bufs * sum(_nbytes(a) for a in consts)
            + N * 3 * D * 4 + 2 * N * N * 4)             # in-kernel qkv/scores
    # TODO(synk): add a q-row grid axis (grid=(B, N // tq)) with online
    # softmax so the per-step VMEM footprint stays bounded for long N.
    return pl.pallas_call(
        functools.partial(_attn_block_kernel, heads=heads, dim=D, eps=eps),
        out_shape=jax.ShapeDtypeStruct((B, N, D), jnp.float32),
        grid=(B,),
        in_specs=[pl.BlockSpec((_SQUEEZED, N, D), lambda b: (b, 0, 0)),
                  pl.BlockSpec((_SQUEEZED, 1, N), lambda b: (b, 0, 0))]
                 + [_const_spec(a.shape) for a in consts],
        out_specs=pl.BlockSpec((_SQUEEZED, N, D), lambda b: (b, 0, 0)),
        compiler_params=_CompilerParams(
            dimension_semantics=("parallel",),
            vmem_limit_bytes=_vmem_limit(need)),
    )(x_bnd, mask_add, *consts)


# ---------------------------------------------------------------------------
# Model: parameter init + forward
# ---------------------------------------------------------------------------

def init_params(key, dim, depth, ff_mult):
    ff = dim * ff_mult
    params = []
    for _ in range(depth):
        key, k_qkv, k_o, k_1, k_2 = jax.random.split(key, 5)
        layer = {
            # fused in-projection weight [Wq | Wk | Wv] -> (D, 3D); matmul
            # weights stored in bf16 (MXU operand dtype), biases / LN in f32.
            "w_qkv": (0.02 * jax.random.normal(k_qkv, (dim, 3 * dim),
                                               jnp.float32)
                      ).astype(jnp.bfloat16),
            "b_qkv": jnp.zeros((1, 3 * dim), jnp.float32),
            "wo": (0.02 * jax.random.normal(k_o, (dim, dim), jnp.float32)
                   ).astype(jnp.bfloat16),
            "bo": jnp.zeros((1, dim), jnp.float32),
            "ln1_g": jnp.ones((1, dim), jnp.float32),
            "ln1_b": jnp.zeros((1, dim), jnp.float32),
            "w1": (0.02 * jax.random.normal(k_1, (dim, ff), jnp.float32)
                   ).astype(jnp.bfloat16),
            "b1": jnp.zeros((1, ff), jnp.float32),
            "w2": (0.02 * jax.random.normal(k_2, (ff, dim), jnp.float32)
                   ).astype(jnp.bfloat16),
            "b2": jnp.zeros((1, dim), jnp.float32),
            "ln2_g": jnp.ones((1, dim), jnp.float32),
            "ln2_b": jnp.zeros((1, dim), jnp.float32),
        }
        params.append(layer)
    final_norm = {"g": jnp.ones((1, dim), jnp.float32),
                  "b": jnp.zeros((1, dim), jnp.float32)}
    return params, final_norm


def transformer_forward(x, padding_mask, layer_params, final_norm, *, heads,
                        max_seq_len):
    B, N, D = x.shape
    assert N <= max_seq_len, (
        f"sequence length {N} must be less than the max sequence length "
        f"{max_seq_len}")
    assert D % heads == 0, f"dim {D} must be divisible by heads {heads}"
    M = B * N

    # key_padding_mask: True => ignore that key position (additive -1e9).
    mask_add = jnp.where(padding_mask, _NEG_INF, 0.0).astype(
        jnp.float32).reshape(B, 1, N)

    h = x.astype(jnp.float32)
    for p in layer_params:
        # --- fused self-attention block (post-norm): QKV + MHA + out-proj +
        #     residual + LayerNorm in one pallas_call per batch element ---
        h = _attention_block(h.reshape(B, N, D), mask_add, p, heads=heads,
                             eps=_LN_EPS)
        # --- fused feed-forward block (post-norm), row-tiled ---
        h = _row_tiled_call(
            functools.partial(_ffn_res_ln_kernel, eps=_LN_EPS),
            [h.reshape(M, D)],
            [p["w1"], p["b1"], p["w2"], p["b2"], p["ln2_g"], p["ln2_b"]], D)

    # final self.norm = nn.LayerNorm(dim)
    out = _row_tiled_call(
        functools.partial(_ln_kernel, eps=_LN_EPS),
        [h.reshape(M, D)], [final_norm["g"], final_norm["b"]], D)
    return out.reshape(B, N, D)


# ---------------------------------------------------------------------------
# Main
# ---------------------------------------------------------------------------

if __name__ == "__main__":
    B, N, D = 2, 8, 32
    heads = 4
    depth = 2
    ff_mult = 4
    max_seq_len = 16

    key = jax.random.PRNGKey(0)
    k_x, k_p = jax.random.split(key)
    x = jax.random.normal(k_x, (B, N, D), jnp.float32)

    # key_padding_mask: True = padded position (last 2 tokens of batch 1)
    padding_mask = jnp.zeros((B, N), dtype=bool)
    padding_mask = padding_mask.at[1, N - 2:].set(True)

    layer_params, final_norm = init_params(k_p, D, depth, ff_mult)

    fwd = jax.jit(functools.partial(transformer_forward, heads=heads,
                                    max_seq_len=max_seq_len))
    out = fwd(x, padding_mask, layer_params, final_norm)
    jax.block_until_ready(out)
    assert out.shape == (B, N, D)
    assert bool(jnp.all(jnp.isfinite(out)))
    print("KERNEL_OK")
</pallas_src>

<mosaic_0001>
module attributes {stable_mosaic.version = 11 : i64} {
  func.func @_ffn_res_ln_kernel(%arg0: i32, %arg1: memref<8x32xf32, #tpu.memory_space<vmem>>, %arg2: memref<32x128xbf16, #tpu.memory_space<vmem>>, %arg3: memref<1x128xf32, #tpu.memory_space<vmem>>, %arg4: memref<128x32xbf16, #tpu.memory_space<vmem>>, %arg5: memref<1x32xf32, #tpu.memory_space<vmem>>, %arg6: memref<1x32xf32, #tpu.memory_space<vmem>>, %arg7: memref<1x32xf32, #tpu.memory_space<vmem>>, %arg8: memref<8x32xf32, #tpu.memory_space<vmem>>) attributes {dimension_semantics = [#tpu.dimension_semantics<parallel>], iteration_bounds = array<i64: 2>, scalar_prefetch = 0 : i64, scratch_operands = 0 : i64, tpu.core_type = #tpu.core_type<tc>, window_params = [{transform_indices = @transform_0, window_bounds = array<i64: 8, 32>}, {pipeline_mode = #tpu.pipeline_mode<synchronous>, transform_indices = @transform_1, window_bounds = array<i64: 32, 128>}, {pipeline_mode = #tpu.pipeline_mode<synchronous>, transform_indices = @transform_2, window_bounds = array<i64: 1, 128>}, {pipeline_mode = #tpu.pipeline_mode<synchronous>, transform_indices = @transform_3, window_bounds = array<i64: 128, 32>}, {pipeline_mode = #tpu.pipeline_mode<synchronous>, transform_indices = @transform_4, window_bounds = array<i64: 1, 32>}, {pipeline_mode = #tpu.pipeline_mode<synchronous>, transform_indices = @transform_5, window_bounds = array<i64: 1, 32>}, {pipeline_mode = #tpu.pipeline_mode<synchronous>, transform_indices = @transform_6, window_bounds = array<i64: 1, 32>}, {transform_indices = @transform_7, window_bounds = array<i64: 8, 32>}]} {
    %c0 = arith.constant 0 : index
    %c0_0 = arith.constant 0 : index
    %0 = vector.load %arg1[%c0, %c0_0] : memref<8x32xf32, #tpu.memory_space<vmem>>, vector<8x32xf32>
    %1 = arith.truncf %0 : vector<8x32xf32> to vector<8x32xbf16>
    %c0_1 = arith.constant 0 : index
    %c0_2 = arith.constant 0 : index
    %2 = vector.load %arg2[%c0_1, %c0_2] : memref<32x128xbf16, #tpu.memory_space<vmem>>, vector<32x128xbf16>
    %cst = arith.constant dense<0.000000e+00> : vector<8x128xf32>
    %3 = tpu.matmul %1, %2, %cst {dimension_numbers = #tpu.dot_dimension_numbers<[1], [0], [0], [1], [0, 0, 1, 1], [], []>} : vector<8x32xbf16>, vector<32x128xbf16>, vector<8x128xf32> -> vector<8x128xf32>
    %c0_3 = arith.constant 0 : index
    %c0_4 = arith.constant 0 : index
    %4 = vector.load %arg3[%c0_3, %c0_4] : memref<1x128xf32, #tpu.memory_space<vmem>>, vector<1x128xf32>
    %5 = vector.broadcast %4 : vector<1x128xf32> to vector<8x128xf32>
    %6 = arith.addf %3, %5 : vector<8x128xf32>
    %cst_5 = arith.constant 0.000000e+00 : f32
    %7 = vector.broadcast %cst_5 : f32 to vector<8x128xf32>
    %8 = arith.maximumf %6, %7 : vector<8x128xf32>
    %9 = arith.truncf %8 : vector<8x128xf32> to vector<8x128xbf16>
    %c0_6 = arith.constant 0 : index
    %c0_7 = arith.constant 0 : index
    %10 = vector.load %arg4[%c0_6, %c0_7] : memref<128x32xbf16, #tpu.memory_space<vmem>>, vector<128x32xbf16>
    %cst_8 = arith.constant dense<0.000000e+00> : vector<8x32xf32>
    %11 = tpu.matmul %9, %10, %cst_8 {dimension_numbers = #tpu.dot_dimension_numbers<[1], [0], [0], [1], [0, 0, 1, 1], [], []>} : vector<8x128xbf16>, vector<128x32xbf16>, vector<8x32xf32> -> vector<8x32xf32>
    %c0_9 = arith.constant 0 : index
    %c0_10 = arith.constant 0 : index
    %12 = vector.load %arg5[%c0_9, %c0_10] : memref<1x32xf32, #tpu.memory_space<vmem>>, vector<1x32xf32>
    %13 = vector.broadcast %12 : vector<1x32xf32> to vector<8x32xf32>
    %14 = arith.addf %11, %13 : vector<8x32xf32>
    %15 = arith.addf %0, %14 : vector<8x32xf32>
    %c0_11 = arith.constant 0 : index
    %c0_12 = arith.constant 0 : index
    %16 = vector.load %arg6[%c0_11, %c0_12] : memref<1x32xf32, #tpu.memory_space<vmem>>, vector<1x32xf32>
    %c0_13 = arith.constant 0 : index
    %c0_14 = arith.constant 0 : index
    %17 = vector.load %arg7[%c0_13, %c0_14] : memref<1x32xf32, #tpu.memory_space<vmem>>, vector<1x32xf32>
    %cst_15 = arith.constant dense<0.000000e+00> : vector<8xf32>
    %18 = vector.multi_reduction <add>, %15, %cst_15 [1] : vector<8x32xf32> to vector<8xf32>
    %19 = vector.shape_cast %18 : vector<8xf32> to vector<8x1xf32>
    %cst_16 = arith.constant 3.125000e-02 : f32
    %20 = vector.broadcast %cst_16 : f32 to vector<8x1xf32>
    %21 = arith.mulf %19, %20 : vector<8x1xf32>
    %22 = vector.broadcast %21 : vector<8x1xf32> to vector<8x32xf32>
    %23 = arith.subf %15, %22 : vector<8x32xf32>
    %24 = arith.mulf %23, %23 : vector<8x32xf32>
    %cst_17 = arith.constant dense<0.000000e+00> : vector<8xf32>
    %25 = vector.multi_reduction <add>, %24, %cst_17 [1] : vector<8x32xf32> to vector<8xf32>
    %26 = vector.shape_cast %25 : vector<8xf32> to vector<8x1xf32>
    %cst_18 = arith.constant 3.125000e-02 : f32
    %27 = vector.broadcast %cst_18 : f32 to vector<8x1xf32>
    %28 = arith.mulf %26, %27 : vector<8x1xf32>
    %cst_19 = arith.constant 9.99999974E-6 : f32
    %29 = vector.broadcast %cst_19 : f32 to vector<8x1xf32>
    %30 = arith.addf %28, %29 : vector<8x1xf32>
    %31 = math.rsqrt %30 : vector<8x1xf32>
    %32 = vector.broadcast %31 : vector<8x1xf32> to vector<8x32xf32>
    %33 = arith.mulf %23, %32 : vector<8x32xf32>
    %34 = vector.broadcast %16 : vector<1x32xf32> to vector<8x32xf32>
    %35 = arith.mulf %33, %34 : vector<8x32xf32>
    %36 = vector.broadcast %17 : vector<1x32xf32> to vector<8x32xf32>
    %37 = arith.addf %35, %36 : vector<8x32xf32>
    %c0_20 = arith.constant 0 : index
    %c0_21 = arith.constant 0 : index
    %38 = vector.load %arg8[%c0_20, %c0_21] : memref<8x32xf32, #tpu.memory_space<vmem>>, vector<8x32xf32>
    tpu.vector_store %arg8[%c0_20, %c0_21], %37 {strides = array<i32>} : memref<8x32xf32, #tpu.memory_space<vmem>>, vector<8x32xf32>,
    return
  }
  func.func @transform_0(%arg0: i32) -> (i32, i32) {
    %c0_i32 = arith.constant 0 : i32
    %c0_i32_0 = arith.constant 0 : i32
    return %arg0, %c0_i32 : i32, i32
  }
  func.func @transform_1(%arg0: i32) -> (i32, i32) {
    %c0_i32 = arith.constant 0 : i32
    %c0_i32_0 = arith.constant 0 : i32
    %c0_i32_1 = arith.constant 0 : i32
    return %c0_i32, %c0_i32_0 : i32, i32
  }
  func.func @transform_2(%arg0: i32) -> (i32, i32) {
    %c0_i32 = arith.constant 0 : i32
    %c0_i32_0 = arith.constant 0 : i32
    %c0_i32_1 = arith.constant 0 : i32
    return %c0_i32, %c0_i32_0 : i32, i32
  }
  func.func @transform_3(%arg0: i32) -> (i32, i32) {
    %c0_i32 = arith.constant 0 : i32
    %c0_i32_0 = arith.constant 0 : i32
    %c0_i32_1 = arith.constant 0 : i32
    return %c0_i32, %c0_i32_0 : i32, i32
  }
  func.func @transform_4(%arg0: i32) -> (i32, i32) {
    %c0_i32 = arith.constant 0 : i32
    %c0_i32_0 = arith.constant 0 : i32
    %c0_i32_1 = arith.constant 0 : i32
    return %c0_i32, %c0_i32_0 : i32, i32
  }
  func.func @transform_5(%arg0: i32) -> (i32, i32) {
    %c0_i32 = arith.constant 0 : i32
    %c0_i32_0 = arith.constant 0 : i32
    %c0_i32_1 = arith.constant 0 : i32
    return %c0_i32, %c0_i32_0 : i32, i32
  }
  func.func @transform_6(%arg0: i32) -> (i32, i32) {
    %c0_i32 = arith.constant 0 : i32
    %c0_i32_0 = arith.constant 0 : i32
    %c0_i32_1 = arith.constant 0 : i32
    return %c0_i32, %c0_i32_0 : i32, i32
  }
  func.func @transform_7(%arg0: i32) -> (i32, i32) {
    %c0_i32 = arith.constant 0 : i32
    %c0_i32_0 = arith.constant 0 : i32
    return %arg0, %c0_i32 : i32, i32
  }
}

module attributes {stable_mosaic.version = 11 : i64} {
  func.func @_attn_block_kernel(%arg0: i32, %arg1: memref<1x8x32xf32, #tpu.memory_space<vmem>>, %arg2: memref<1x1x8xf32, #tpu.memory_space<vmem>>, %arg3: memref<32x96xbf16, #tpu.memory_space<vmem>>, %arg4: memref<1x96xf32, #tpu.memory_space<vmem>>, %arg5: memref<32x32xbf16, #tpu.memory_space<vmem>>, %arg6: memref<1x32xf32, #tpu.memory_space<vmem>>, %arg7: memref<1x32xf32, #tpu.memory_space<vmem>>, %arg8: memref<1x32xf32, #tpu.memory_space<vmem>>, %arg9: memref<1x8x32xf32, #tpu.memory_space<vmem>>) attributes {dimension_semantics = [#tpu.dimension_semantics<parallel>], iteration_bounds = array<i64: 2>, scalar_prefetch = 0 : i64, scratch_operands = 0 : i64, tpu.core_type = #tpu.core_type<tc>, window_params = [{transform_indices = @transform_0, window_bounds = array<i64: 1, 8, 32>}, {transform_indices = @transform_1, window_bounds = array<i64: 1, 1, 8>}, {pipeline_mode = #tpu.pipeline_mode<synchronous>, transform_indices = @transform_2, window_bounds = array<i64: 32, 96>}, {pipeline_mode = #tpu.pipeline_mode<synchronous>, transform_indices = @transform_3, window_bounds = array<i64: 1, 96>}, {pipeline_mode = #tpu.pipeline_mode<synchronous>, transform_indices = @transform_4, window_bounds = array<i64: 32, 32>}, {pipeline_mode = #tpu.pipeline_mode<synchronous>, transform_indices = @transform_5, window_bounds = array<i64: 1, 32>}, {pipeline_mode = #tpu.pipeline_mode<synchronous>, transform_indices = @transform_6, window_bounds = array<i64: 1, 32>}, {pipeline_mode = #tpu.pipeline_mode<synchronous>, transform_indices = @transform_7, window_bounds = array<i64: 1, 32>}, {transform_indices = @transform_8, window_bounds = array<i64: 1, 8, 32>}]} {
    %c0 = arith.constant 0 : index
    %c0_0 = arith.constant 0 : index
    %c0_1 = arith.constant 0 : index
    %0 = vector.load %arg1[%c0, %c0_0, %c0_1] : memref<1x8x32xf32, #tpu.memory_space<vmem>>, vector<1x8x32xf32>
    %1 = vector.shape_cast %0 : vector<1x8x32xf32> to vector<8x32xf32>
    %2 = arith.truncf %1 : vector<8x32xf32> to vector<8x32xbf16>
    %c0_2 = arith.constant 0 : index
    %c0_3 = arith.constant 0 : index
    %3 = vector.load %arg3[%c0_2, %c0_3] : memref<32x96xbf16, #tpu.memory_space<vmem>>, vector<32x96xbf16>
    %cst = arith.constant dense<0.000000e+00> : vector<8x96xf32>
    %4 = tpu.matmul %2, %3, %cst {dimension_numbers = #tpu.dot_dimension_numbers<[1], [0], [0], [1], [0, 0, 1, 1], [], []>} : vector<8x32xbf16>, vector<32x96xbf16>, vector<8x96xf32> -> vector<8x96xf32>
    %c0_4 = arith.constant 0 : index
    %c0_5 = arith.constant 0 : index
    %5 = vector.load %arg4[%c0_4, %c0_5] : memref<1x96xf32, #tpu.memory_space<vmem>>, vector<1x96xf32>
    %6 = vector.broadcast %5 : vector<1x96xf32> to vector<8x96xf32>
    %7 = arith.addf %4, %6 : vector<8x96xf32>
    %c0_6 = arith.constant 0 : index
    %c0_7 = arith.constant 0 : index
    %c0_8 = arith.constant 0 : index
    %8 = vector.load %arg2[%c0_6, %c0_7, %c0_8] : memref<1x1x8xf32, #tpu.memory_space<vmem>>, vector<1x1x8xf32>
    %9 = vector.shape_cast %8 : vector<1x1x8xf32> to vector<1x8xf32>
    %10 = vector.shape_cast %9 : vector<1x8xf32> to vector<1x8xf32>
    %11 = vector.broadcast %10 : vector<1x8xf32> to vector<8x8xf32>
    %12 = vector.extract_strided_slice %7 {offsets = [0, 0], sizes = [8, 8], strides = [1, 1]} : vector<8x96xf32> to vector<8x8xf32>
    %13 = arith.truncf %12 : vector<8x8xf32> to vector<8x8xbf16>
    %14 = vector.extract_strided_slice %7 {offsets = [0, 32], sizes = [8, 8], strides = [1, 1]} : vector<8x96xf32> to vector<8x8xf32>
    %15 = arith.truncf %14 : vector<8x8xf32> to vector<8x8xbf16>
    %16 = vector.extract_strided_slice %7 {offsets = [0, 64], sizes = [8, 8], strides = [1, 1]} : vector<8x96xf32> to vector<8x8xf32>
    %17 = arith.truncf %16 : vector<8x8xf32> to vector<8x8xbf16>
    %cst_9 = arith.constant dense<0.000000e+00> : vector<8x8xf32>
    %18 = tpu.matmul %13, %15, %cst_9 {dimension_numbers = #tpu.dot_dimension_numbers<[1], [1], [0], [0], [0, 0, 1, 0], [], []>} : vector<8x8xbf16>, vector<8x8xbf16>, vector<8x8xf32> -> vector<8x8xf32>
    %cst_10 = arith.constant 0.353553385 : f32
    %19 = vector.broadcast %cst_10 : f32 to vector<8x8xf32>
    %20 = arith.mulf %18, %19 : vector<8x8xf32>
    %21 = arith.addf %20, %11 : vector<8x8xf32>
    %cst_11 = arith.constant dense<0xFF800000> : vector<8xf32>
    %22 = vector.multi_reduction <maximumf>, %21, %cst_11 [1] : vector<8x8xf32> to vector<8xf32>
    %23 = vector.shape_cast %22 : vector<8xf32> to vector<8x1xf32>
    %24 = vector.broadcast %23 : vector<8x1xf32> to vector<8x8xf32>
    %25 = arith.subf %21, %24 : vector<8x8xf32>
    %26 = math.exp %25 : vector<8x8xf32>
    %cst_12 = arith.constant dense<0.000000e+00> : vector<8xf32>
    %27 = vector.multi_reduction <add>, %26, %cst_12 [1] : vector<8x8xf32> to vector<8xf32>
    %28 = vector.shape_cast %27 : vector<8xf32> to vector<8x1xf32>
    %29 = tpu.reciprocal %28 {approx = true} : vector<8x1xf32> -> vector<8x1xf32>
    %30 = vector.broadcast %29 : vector<8x1xf32> to vector<8x8xf32>
    %31 = arith.mulf %26, %30 : vector<8x8xf32>
    %32 = arith.truncf %31 : vector<8x8xf32> to vector<8x8xbf16>
    %cst_13 = arith.constant dense<0.000000e+00> : vector<8x8xf32>
    %33 = tpu.matmul %32, %17, %cst_13 {dimension_numbers = #tpu.dot_dimension_numbers<[1], [0], [0], [1], [0, 0, 1, 1], [], []>} : vector<8x8xbf16>, vector<8x8xbf16>, vector<8x8xf32> -> vector<8x8xf32>
    %34 = vector.extract_strided_slice %7 {offsets = [0, 8], sizes = [8, 8], strides = [1, 1]} : vector<8x96xf32> to vector<8x8xf32>
    %35 = arith.truncf %34 : vector<8x8xf32> to vector<8x8xbf16>
    %36 = vector.extract_strided_slice %7 {offsets = [0, 40], sizes = [8, 8], strides = [1, 1]} : vector<8x96xf32> to vector<8x8xf32>
    %37 = arith.truncf %36 : vector<8x8xf32> to vector<8x8xbf16>
    %38 = vector.extract_strided_slice %7 {offsets = [0, 72], sizes = [8, 8], strides = [1, 1]} : vector<8x96xf32> to vector<8x8xf32>
    %39 = arith.truncf %38 : vector<8x8xf32> to vector<8x8xbf16>
    %cst_14 = arith.constant dense<0.000000e+00> : vector<8x8xf32>
    %40 = tpu.matmul %35, %37, %cst_14 {dimension_numbers = #tpu.dot_dimension_numbers<[1], [1], [0], [0], [0, 0, 1, 0], [], []>} : vector<8x8xbf16>, vector<8x8xbf16>, vector<8x8xf32> -> vector<8x8xf32>
    %cst_15 = arith.constant 0.353553385 : f32
    %41 = vector.broadcast %cst_15 : f32 to vector<8x8xf32>
    %42 = arith.mulf %40, %41 : vector<8x8xf32>
    %43 = arith.addf %42, %11 : vector<8x8xf32>
    %cst_16 = arith.constant dense<0xFF800000> : vector<8xf32>
    %44 = vector.multi_reduction <maximumf>, %43, %cst_16 [1] : vector<8x8xf32> to vector<8xf32>
    %45 = vector.shape_cast %44 : vector<8xf32> to vector<8x1xf32>
    %46 = vector.broadcast %45 : vector<8x1xf32> to vector<8x8xf32>
    %47 = arith.subf %43, %46 : vector<8x8xf32>
    %48 = math.exp %47 : vector<8x8xf32>
    %cst_17 = arith.constant dense<0.000000e+00> : vector<8xf32>
    %49 = vector.multi_reduction <add>, %48, %cst_17 [1] : vector<8x8xf32> to vector<8xf32>
    %50 = vector.shape_cast %49 : vector<8xf32> to vector<8x1xf32>
    %51 = tpu.reciprocal %50 {approx = true} : vector<8x1xf32> -> vector<8x1xf32>
    %52 = vector.broadcast %51 : vector<8x1xf32> to vector<8x8xf32>
    %53 = arith.mulf %48, %52 : vector<8x8xf32>
    %54 = arith.truncf %53 : vector<8x8xf32> to vector<8x8xbf16>
    %cst_18 = arith.constant dense<0.000000e+00> : vector<8x8xf32>
    %55 = tpu.matmul %54, %39, %cst_18 {dimension_numbers = #tpu.dot_dimension_numbers<[1], [0], [0], [1], [0, 0, 1, 1], [], []>} : vector<8x8xbf16>, vector<8x8xbf16>, vector<8x8xf32> -> vector<8x8xf32>
    %56 = vector.extract_strided_slice %7 {offsets = [0, 16], sizes = [8, 8], strides = [1, 1]} : vector<8x96xf32> to vector<8x8xf32>
    %57 = arith.truncf %56 : vector<8x8xf32> to vector<8x8xbf16>
    %58 = vector.extract_strided_slice %7 {offsets = [0, 48], sizes = [8, 8], strides = [1, 1]} : vector<8x96xf32> to vector<8x8xf32>
    %59 = arith.truncf %58 : vector<8x8xf32> to vector<8x8xbf16>
    %60 = vector.extract_strided_slice %7 {offsets = [0, 80], sizes = [8, 8], strides = [1, 1]} : vector<8x96xf32> to vector<8x8xf32>
    %61 = arith.truncf %60 : vector<8x8xf32> to vector<8x8xbf16>
    %cst_19 = arith.constant dense<0.000000e+00> : vector<8x8xf32>
    %62 = tpu.matmul %57, %59, %cst_19 {dimension_numbers = #tpu.dot_dimension_numbers<[1], [1], [0], [0], [0, 0, 1, 0], [], []>} : vector<8x8xbf16>, vector<8x8xbf16>, vector<8x8xf32> -> vector<8x8xf32>
    %cst_20 = arith.constant 0.353553385 : f32
    %63 = vector.broadcast %cst_20 : f32 to vector<8x8xf32>
    %64 = arith.mulf %62, %63 : vector<8x8xf32>
    %65 = arith.addf %64, %11 : vector<8x8xf32>
    %cst_21 = arith.constant dense<0xFF800000> : vector<8xf32>
    %66 = vector.multi_reduction <maximumf>, %65, %cst_21 [1] : vector<8x8xf32> to vector<8xf32>
    %67 = vector.shape_cast %66 : vector<8xf32> to vector<8x1xf32>
    %68 = vector.broadcast %67 : vector<8x1xf32> to vector<8x8xf32>
    %69 = arith.subf %65, %68 : vector<8x8xf32>
    %70 = math.exp %69 : vector<8x8xf32>
    %cst_22 = arith.constant dense<0.000000e+00> : vector<8xf32>
    %71 = vector.multi_reduction <add>, %70, %cst_22 [1] : vector<8x8xf32> to vector<8xf32>
    %72 = vector.shape_cast %71 : vector<8xf32> to vector<8x1xf32>
    %73 = tpu.reciprocal %72 {approx = true} : vector<8x1xf32> -> vector<8x1xf32>
    %74 = vector.broadcast %73 : vector<8x1xf32> to vector<8x8xf32>
    %75 = arith.mulf %70, %74 : vector<8x8xf32>
    %76 = arith.truncf %75 : vector<8x8xf32> to vector<8x8xbf16>
    %cst_23 = arith.constant dense<0.000000e+00> : vector<8x8xf32>
    %77 = tpu.matmul %76, %61, %cst_23 {dimension_numbers = #tpu.dot_dimension_numbers<[1], [0], [0], [1], [0, 0, 1, 1], [], []>} : vector<8x8xbf16>, vector<8x8xbf16>, vector<8x8xf32> -> vector<8x8xf32>
    %78 = vector.extract_strided_slice %7 {offsets = [0, 24], sizes = [8, 8], strides = [1, 1]} : vector<8x96xf32> to vector<8x8xf32>
    %79 = arith.truncf %78 : vector<8x8xf32> to vector<8x8xbf16>
    %80 = vector.extract_strided_slice %7 {offsets = [0, 56], sizes = [8, 8], strides = [1, 1]} : vector<8x96xf32> to vector<8x8xf32>
    %81 = arith.truncf %80 : vector<8x8xf32> to vector<8x8xbf16>
    %82 = vector.extract_strided_slice %7 {offsets = [0, 88], sizes = [8, 8], strides = [1, 1]} : vector<8x96xf32> to vector<8x8xf32>
    %83 = arith.truncf %82 : vector<8x8xf32> to vector<8x8xbf16>
    %cst_24 = arith.constant dense<0.000000e+00> : vector<8x8xf32>
    %84 = tpu.matmul %79, %81, %cst_24 {dimension_numbers = #tpu.dot_dimension_numbers<[1], [1], [0], [0], [0, 0, 1, 0], [], []>} : vector<8x8xbf16>, vector<8x8xbf16>, vector<8x8xf32> -> vector<8x8xf32>
    %cst_25 = arith.constant 0.353553385 : f32
    %85 = vector.broadcast %cst_25 : f32 to vector<8x8xf32>
    %86 = arith.mulf %84, %85 : vector<8x8xf32>
    %87 = arith.addf %86, %11 : vector<8x8xf32>
    %cst_26 = arith.constant dense<0xFF800000> : vector<8xf32>
    %88 = vector.multi_reduction <maximumf>, %87, %cst_26 [1] : vector<8x8xf32> to vector<8xf32>
    %89 = vector.shape_cast %88 : vector<8xf32> to vector<8x1xf32>
    %90 = vector.broadcast %89 : vector<8x1xf32> to vector<8x8xf32>
    %91 = arith.subf %87, %90 : vector<8x8xf32>
    %92 = math.exp %91 : vector<8x8xf32>
    %cst_27 = arith.constant dense<0.000000e+00> : vector<8xf32>
    %93 = vector.multi_reduction <add>, %92, %cst_27 [1] : vector<8x8xf32> to vector<8xf32>
    %94 = vector.shape_cast %93 : vector<8xf32> to vector<8x1xf32>
    %95 = tpu.reciprocal %94 {approx = true} : vector<8x1xf32> -> vector<8x1xf32>
    %96 = vector.broadcast %95 : vector<8x1xf32> to vector<8x8xf32>
    %97 = arith.mulf %92, %96 : vector<8x8xf32>
    %98 = arith.truncf %97 : vector<8x8xf32> to vector<8x8xbf16>
    %cst_28 = arith.constant dense<0.000000e+00> : vector<8x8xf32>
    %99 = tpu.matmul %98, %83, %cst_28 {dimension_numbers = #tpu.dot_dimension_numbers<[1], [0], [0], [1], [0, 0, 1, 1], [], []>} : vector<8x8xbf16>, vector<8x8xbf16>, vector<8x8xf32> -> vector<8x8xf32>
    %100 = tpu.concatenate %33, %55, %77, %99 in 1 : vector<8x8xf32>, vector<8x8xf32>, vector<8x8xf32>, vector<8x8xf32> -> vector<8x32xf32>
    %101 = arith.truncf %100 : vector<8x32xf32> to vector<8x32xbf16>
    %c0_29 = arith.constant 0 : index
    %c0_30 = arith.constant 0 : index
    %102 = vector.load %arg5[%c0_29, %c0_30] : memref<32x32xbf16, #tpu.memory_space<vmem>>, vector<32x32xbf16>
    %cst_31 = arith.constant dense<0.000000e+00> : vector<8x32xf32>
    %103 = tpu.matmul %101, %102, %cst_31 {dimension_numbers = #tpu.dot_dimension_numbers<[1], [0], [0], [1], [0, 0, 1, 1], [], []>} : vector<8x32xbf16>, vector<32x32xbf16>, vector<8x32xf32> -> vector<8x32xf32>
    %c0_32 = arith.constant 0 : index
    %c0_33 = arith.constant 0 : index
    %104 = vector.load %arg6[%c0_32, %c0_33] : memref<1x32xf32, #tpu.memory_space<vmem>>, vector<1x32xf32>
    %105 = vector.broadcast %104 : vector<1x32xf32> to vector<8x32xf32>
    %106 = arith.addf %103, %105 : vector<8x32xf32>
    %107 = arith.addf %1, %106 : vector<8x32xf32>
    %c0_34 = arith.constant 0 : index
    %c0_35 = arith.constant 0 : index
    %108 = vector.load %arg7[%c0_34, %c0_35] : memref<1x32xf32, #tpu.memory_space<vmem>>, vector<1x32xf32>
    %c0_36 = arith.constant 0 : index
    %c0_37 = arith.constant 0 : index
    %109 = vector.load %arg8[%c0_36, %c0_37] : memref<1x32xf32, #tpu.memory_space<vmem>>, vector<1x32xf32>
    %cst_38 = arith.constant dense<0.000000e+00> : vector<8xf32>
    %110 = vector.multi_reduction <add>, %107, %cst_38 [1] : vector<8x32xf32> to vector<8xf32>
    %111 = vector.shape_cast %110 : vector<8xf32> to vector<8x1xf32>
    %cst_39 = arith.constant 3.125000e-02 : f32
    %112 = vector.broadcast %cst_39 : f32 to vector<8x1xf32>
    %113 = arith.mulf %111, %112 : vector<8x1xf32>
    %114 = vector.broadcast %113 : vector<8x1xf32> to vector<8x32xf32>
    %115 = arith.subf %107, %114 : vector<8x32xf32>
    %116 = arith.mulf %115, %115 : vector<8x32xf32>
    %cst_40 = arith.constant dense<0.000000e+00> : vector<8xf32>
    %117 = vector.multi_reduction <add>, %116, %cst_40 [1] : vector<8x32xf32> to vector<8xf32>
    %118 = vector.shape_cast %117 : vector<8xf32> to vector<8x1xf32>
    %cst_41 = arith.constant 3.125000e-02 : f32
    %119 = vector.broadcast %cst_41 : f32 to vector<8x1xf32>
    %120 = arith.mulf %118, %119 : vector<8x1xf32>
    %cst_42 = arith.constant 9.99999974E-6 : f32
    %121 = vector.broadcast %cst_42 : f32 to vector<8x1xf32>
    %122 = arith.addf %120, %121 : vector<8x1xf32>
    %123 = math.rsqrt %122 : vector<8x1xf32>
    %124 = vector.broadcast %123 : vector<8x1xf32> to vector<8x32xf32>
    %125 = arith.mulf %115, %124 : vector<8x32xf32>
    %126 = vector.broadcast %108 : vector<1x32xf32> to vector<8x32xf32>
    %127 = arith.mulf %125, %126 : vector<8x32xf32>
    %128 = vector.broadcast %109 : vector<1x32xf32> to vector<8x32xf32>
    %129 = arith.addf %127, %128 : vector<8x32xf32>
    %c0_43 = arith.constant 0 : index
    %c0_44 = arith.constant 0 : index
    %c0_45 = arith.constant 0 : index
    %130 = vector.load %arg9[%c0_43, %c0_44, %c0_45] : memref<1x8x32xf32, #tpu.memory_space<vmem>>, vector<1x8x32xf32>
    %131 = vector.shape_cast %130 : vector<1x8x32xf32> to vector<8x32xf32>
    %132 = vector.shape_cast %129 : vector<8x32xf32> to vector<1x8x32xf32>
    tpu.vector_store %arg9[%c0_43, %c0_44, %c0_45], %132 {strides = array<i32>} : memref<1x8x32xf32, #tpu.memory_space<vmem>>, vector<1x8x32xf32>,
    return
  }
  func.func @transform_0(%arg0: i32) -> (i32, i32, i32) {
    %c0_i32 = arith.constant 0 : i32
    %c0_i32_0 = arith.constant 0 : i32
    %c0_i32_1 = arith.constant 0 : i32
    return %arg0, %c0_i32, %c0_i32_0 : i32, i32, i32
  }
  func.func @transform_1(%arg0: i32) -> (i32, i32, i32) {
    %c0_i32 = arith.constant 0 : i32
    %c0_i32_0 = arith.constant 0 : i32
    %c0_i32_1 = arith.constant 0 : i32
    return %arg0, %c0_i32, %c0_i32_0 : i32, i32, i32
  }
  func.func @transform_2(%arg0: i32) -> (i32, i32) {
    %c0_i32 = arith.constant 0 : i32
    %c0_i32_0 = arith.constant 0 : i32
    %c0_i32_1 = arith.constant 0 : i32
    return %c0_i32, %c0_i32_0 : i32, i32
  }
  func.func @transform_3(%arg0: i32) -> (i32, i32) {
    %c0_i32 = arith.constant 0 : i32
    %c0_i32_0 = arith.constant 0 : i32
    %c0_i32_1 = arith.constant 0 : i32
    return %c0_i32, %c0_i32_0 : i32, i32
  }
  func.func @transform_4(%arg0: i32) -> (i32, i32) {
    %c0_i32 = arith.constant 0 : i32
    %c0_i32_0 = arith.constant 0 : i32
    %c0_i32_1 = arith.constant 0 : i32
    return %c0_i32, %c0_i32_0 : i32, i32
  }
  func.func @transform_5(%arg0: i32) -> (i32, i32) {
    %c0_i32 = arith.constant 0 : i32
    %c0_i32_0 = arith.constant 0 : i32
    %c0_i32_1 = arith.constant 0 : i32
    return %c0_i32, %c0_i32_0 : i32, i32
  }
  func.func @transform_6(%arg0: i32) -> (i32, i32) {
    %c0_i32 = arith.constant 0 : i32
    %c0_i32_0 = arith.constant 0 : i32
    %c0_i32_1 = arith.constant 0 : i32
    return %c0_i32, %c0_i32_0 : i32, i32
  }
  func.func @transform_7(%arg0: i32) -> (i32, i32) {
    %c0_i32 = arith.constant 0 : i32
    %c0_i32_0 = arith.constant 0 : i32
    %c0_i32_1 = arith.constant 0 : i32
    return %c0_i32, %c0_i32_0 : i32, i32
  }
  func.func @transform_8(%arg0: i32) -> (i32, i32, i32) {
    %c0_i32 = arith.constant 0 : i32
    %c0_i32_0 = arith.constant 0 : i32
    %c0_i32_1 = arith.constant 0 : i32
    return %arg0, %c0_i32, %c0_i32_0 : i32, i32, i32
  }
}

module attributes {stable_mosaic.version = 11 : i64} {
  func.func @_ln_kernel(%arg0: i32, %arg1: memref<8x32xf32, #tpu.memory_space<vmem>>, %arg2: memref<1x32xf32, #tpu.memory_space<vmem>>, %arg3: memref<1x32xf32, #tpu.memory_space<vmem>>, %arg4: memref<8x32xf32, #tpu.memory_space<vmem>>) attributes {dimension_semantics = [#tpu.dimension_semantics<parallel>], iteration_bounds = array<i64: 2>, scalar_prefetch = 0 : i64, scratch_operands = 0 : i64, tpu.core_type = #tpu.core_type<tc>, window_params = [{transform_indices = @transform_0, window_bounds = array<i64: 8, 32>}, {pipeline_mode = #tpu.pipeline_mode<synchronous>, transform_indices = @transform_1, window_bounds = array<i64: 1, 32>}, {pipeline_mode = #tpu.pipeline_mode<synchronous>, transform_indices = @transform_2, window_bounds = array<i64: 1, 32>}, {transform_indices = @transform_3, window_bounds = array<i64: 8, 32>}]} {
    %c0 = arith.constant 0 : index
    %c0_0 = arith.constant 0 : index
    %0 = vector.load %arg1[%c0, %c0_0] : memref<8x32xf32, #tpu.memory_space<vmem>>, vector<8x32xf32>
    %c0_1 = arith.constant 0 : index
    %c0_2 = arith.constant 0 : index
    %1 = vector.load %arg2[%c0_1, %c0_2] : memref<1x32xf32, #tpu.memory_space<vmem>>, vector<1x32xf32>
    %c0_3 = arith.constant 0 : index
    %c0_4 = arith.constant 0 : index
    %2 = vector.load %arg3[%c0_3, %c0_4] : memref<1x32xf32, #tpu.memory_space<vmem>>, vector<1x32xf32>
    %cst = arith.constant dense<0.000000e+00> : vector<8xf32>
    %3 = vector.multi_reduction <add>, %0, %cst [1] : vector<8x32xf32> to vector<8xf32>
    %4 = vector.shape_cast %3 : vector<8xf32> to vector<8x1xf32>
    %cst_5 = arith.constant 3.125000e-02 : f32
    %5 = vector.broadcast %cst_5 : f32 to vector<8x1xf32>
    %6 = arith.mulf %4, %5 : vector<8x1xf32>
    %7 = vector.broadcast %6 : vector<8x1xf32> to vector<8x32xf32>
    %8 = arith.subf %0, %7 : vector<8x32xf32>
    %9 = arith.mulf %8, %8 : vector<8x32xf32>
    %cst_6 = arith.constant dense<0.000000e+00> : vector<8xf32>
    %10 = vector.multi_reduction <add>, %9, %cst_6 [1] : vector<8x32xf32> to vector<8xf32>
    %11 = vector.shape_cast %10 : vector<8xf32> to vector<8x1xf32>
    %cst_7 = arith.constant 3.125000e-02 : f32
    %12 = vector.broadcast %cst_7 : f32 to vector<8x1xf32>
    %13 = arith.mulf %11, %12 : vector<8x1xf32>
    %cst_8 = arith.constant 9.99999974E-6 : f32
    %14 = vector.broadcast %cst_8 : f32 to vector<8x1xf32>
    %15 = arith.addf %13, %14 : vector<8x1xf32>
    %16 = math.rsqrt %15 : vector<8x1xf32>
    %17 = vector.broadcast %16 : vector<8x1xf32> to vector<8x32xf32>
    %18 = arith.mulf %8, %17 : vector<8x32xf32>
    %19 = vector.broadcast %1 : vector<1x32xf32> to vector<8x32xf32>
    %20 = arith.mulf %18, %19 : vector<8x32xf32>
    %21 = vector.broadcast %2 : vector<1x32xf32> to vector<8x32xf32>
    %22 = arith.addf %20, %21 : vector<8x32xf32>
    %c0_9 = arith.constant 0 : index
    %c0_10 = arith.constant 0 : index
    %23 = vector.load %arg4[%c0_9, %c0_10] : memref<8x32xf32, #tpu.memory_space<vmem>>, vector<8x32xf32>
    tpu.vector_store %arg4[%c0_9, %c0_10], %22 {strides = array<i32>} : memref<8x32xf32, #tpu.memory_space<vmem>>, vector<8x32xf32>,
    return
  }
  func.func @transform_0(%arg0: i32) -> (i32, i32) {
    %c0_i32 = arith.constant 0 : i32
    %c0_i32_0 = arith.constant 0 : i32
    return %arg0, %c0_i32 : i32, i32
  }
  func.func @transform_1(%arg0: i32) -> (i32, i32) {
    %c0_i32 = arith.constant 0 : i32
    %c0_i32_0 = arith.constant 0 : i32
    %c0_i32_1 = arith.constant 0 : i32
    return %c0_i32, %c0_i32_0 : i32, i32
  }
  func.func @transform_2(%arg0: i32) -> (i32, i32) {
    %c0_i32 = arith.constant 0 : i32
    %c0_i32_0 = arith.constant 0 : i32
    %c0_i32_1 = arith.constant 0 : i32
    return %c0_i32, %c0_i32_0 : i32, i32
  }
  func.func @transform_3(%arg0: i32) -> (i32, i32) {
    %c0_i32 = arith.constant 0 : i32
    %c0_i32_0 = arith.constant 0 : i32
    return %arg0, %c0_i32 : i32, i32
  }
}

module attributes {stable_mosaic.version = 11 : i64} {
  func.func @_attn_block_kernel(%arg0: i32, %arg1: memref<1x8x32xf32, #tpu.memory_space<vmem>>, %arg2: memref<1x1x8xf32, #tpu.memory_space<vmem>>, %arg3: memref<32x96xbf16, #tpu.memory_space<vmem>>, %arg4: memref<1x96xf32, #tpu.memory_space<vmem>>, %arg5: memref<32x32xbf16, #tpu.memory_space<vmem>>, %arg6: memref<1x32xf32, #tpu.memory_space<vmem>>, %arg7: memref<1x32xf32, #tpu.memory_space<vmem>>, %arg8: memref<1x32xf32, #tpu.memory_space<vmem>>, %arg9: memref<1x8x32xf32, #tpu.memory_space<vmem>>) attributes {dimension_semantics = [#tpu.dimension_semantics<parallel>], iteration_bounds = array<i64: 2>, scalar_prefetch = 0 : i64, scratch_operands = 0 : i64, tpu.core_type = #tpu.core_type<tc>, window_params = [{transform_indices = @transform_0, window_bounds = array<i64: 1, 8, 32>}, {transform_indices = @transform_1, window_bounds = array<i64: 1, 1, 8>}, {pipeline_mode = #tpu.pipeline_mode<synchronous>, transform_indices = @transform_2, window_bounds = array<i64: 32, 96>}, {pipeline_mode = #tpu.pipeline_mode<synchronous>, transform_indices = @transform_3, window_bounds = array<i64: 1, 96>}, {pipeline_mode = #tpu.pipeline_mode<synchronous>, transform_indices = @transform_4, window_bounds = array<i64: 32, 32>}, {pipeline_mode = #tpu.pipeline_mode<synchronous>, transform_indices = @transform_5, window_bounds = array<i64: 1, 32>}, {pipeline_mode = #tpu.pipeline_mode<synchronous>, transform_indices = @transform_6, window_bounds = array<i64: 1, 32>}, {pipeline_mode = #tpu.pipeline_mode<synchronous>, transform_indices = @transform_7, window_bounds = array<i64: 1, 32>}, {transform_indices = @transform_8, window_bounds = array<i64: 1, 8, 32>}]} {
    %c0 = arith.constant 0 : index
    %c0_0 = arith.constant 0 : index
    %c0_1 = arith.constant 0 : index
    %0 = vector.load %arg1[%c0, %c0_0, %c0_1] : memref<1x8x32xf32, #tpu.memory_space<vmem>>, vector<1x8x32xf32>
    %1 = vector.shape_cast %0 : vector<1x8x32xf32> to vector<8x32xf32>
    %2 = arith.truncf %1 : vector<8x32xf32> to vector<8x32xbf16>
    %c0_2 = arith.constant 0 : index
    %c0_3 = arith.constant 0 : index
    %3 = vector.load %arg3[%c0_2, %c0_3] : memref<32x96xbf16, #tpu.memory_space<vmem>>, vector<32x96xbf16>
    %cst = arith.constant dense<0.000000e+00> : vector<8x96xf32>
    %4 = tpu.matmul %2, %3, %cst {dimension_numbers = #tpu.dot_dimension_numbers<[1], [0], [0], [1], [0, 0, 1, 1], [], []>} : vector<8x32xbf16>, vector<32x96xbf16>, vector<8x96xf32> -> vector<8x96xf32>
    %c0_4 = arith.constant 0 : index
    %c0_5 = arith.constant 0 : index
    %5 = vector.load %arg4[%c0_4, %c0_5] : memref<1x96xf32, #tpu.memory_space<vmem>>, vector<1x96xf32>
    %6 = vector.broadcast %5 : vector<1x96xf32> to vector<8x96xf32>
    %7 = arith.addf %4, %6 : vector<8x96xf32>
    %c0_6 = arith.constant 0 : index
    %c0_7 = arith.constant 0 : index
    %c0_8 = arith.constant 0 : index
    %8 = vector.load %arg2[%c0_6, %c0_7, %c0_8] : memref<1x1x8xf32, #tpu.memory_space<vmem>>, vector<1x1x8xf32>
    %9 = vector.shape_cast %8 : vector<1x1x8xf32> to vector<1x8xf32>
    %10 = vector.shape_cast %9 : vector<1x8xf32> to vector<1x8xf32>
    %11 = vector.broadcast %10 : vector<1x8xf32> to vector<8x8xf32>
    %12 = vector.extract_strided_slice %7 {offsets = [0, 0], sizes = [8, 8], strides = [1, 1]} : vector<8x96xf32> to vector<8x8xf32>
    %13 = arith.truncf %12 : vector<8x8xf32> to vector<8x8xbf16>
    %14 = vector.extract_strided_slice %7 {offsets = [0, 32], sizes = [8, 8], strides = [1, 1]} : vector<8x96xf32> to vector<8x8xf32>
    %15 = arith.truncf %14 : vector<8x8xf32> to vector<8x8xbf16>
    %16 = vector.extract_strided_slice %7 {offsets = [0, 64], sizes = [8, 8], strides = [1, 1]} : vector<8x96xf32> to vector<8x8xf32>
    %17 = arith.truncf %16 : vector<8x8xf32> to vector<8x8xbf16>
    %cst_9 = arith.constant dense<0.000000e+00> : vector<8x8xf32>
    %18 = tpu.matmul %13, %15, %cst_9 {dimension_numbers = #tpu.dot_dimension_numbers<[1], [1], [0], [0], [0, 0, 1, 0], [], []>} : vector<8x8xbf16>, vector<8x8xbf16>, vector<8x8xf32> -> vector<8x8xf32>
    %cst_10 = arith.constant 0.353553385 : f32
    %19 = vector.broadcast %cst_10 : f32 to vector<8x8xf32>
    %20 = arith.mulf %18, %19 : vector<8x8xf32>
    %21 = arith.addf %20, %11 : vector<8x8xf32>
    %cst_11 = arith.constant dense<0xFF800000> : vector<8xf32>
    %22 = vector.multi_reduction <maximumf>, %21, %cst_11 [1] : vector<8x8xf32> to vector<8xf32>
    %23 = vector.shape_cast %22 : vector<8xf32> to vector<8x1xf32>
    %24 = vector.broadcast %23 : vector<8x1xf32> to vector<8x8xf32>
    %25 = arith.subf %21, %24 : vector<8x8xf32>
    %26 = math.exp %25 : vector<8x8xf32>
    %cst_12 = arith.constant dense<0.000000e+00> : vector<8xf32>
    %27 = vector.multi_reduction <add>, %26, %cst_12 [1] : vector<8x8xf32> to vector<8xf32>
    %28 = vector.shape_cast %27 : vector<8xf32> to vector<8x1xf32>
    %29 = tpu.reciprocal %28 {approx = true} : vector<8x1xf32> -> vector<8x1xf32>
    %30 = vector.broadcast %29 : vector<8x1xf32> to vector<8x8xf32>
    %31 = arith.mulf %26, %30 : vector<8x8xf32>
    %32 = arith.truncf %31 : vector<8x8xf32> to vector<8x8xbf16>
    %cst_13 = arith.constant dense<0.000000e+00> : vector<8x8xf32>
    %33 = tpu.matmul %32, %17, %cst_13 {dimension_numbers = #tpu.dot_dimension_numbers<[1], [0], [0], [1], [0, 0, 1, 1], [], []>} : vector<8x8xbf16>, vector<8x8xbf16>, vector<8x8xf32> -> vector<8x8xf32>
    %34 = vector.extract_strided_slice %7 {offsets = [0, 8], sizes = [8, 8], strides = [1, 1]} : vector<8x96xf32> to vector<8x8xf32>
    %35 = arith.truncf %34 : vector<8x8xf32> to vector<8x8xbf16>
    %36 = vector.extract_strided_slice %7 {offsets = [0, 40], sizes = [8, 8], strides = [1, 1]} : vector<8x96xf32> to vector<8x8xf32>
    %37 = arith.truncf %36 : vector<8x8xf32> to vector<8x8xbf16>
    %38 = vector.extract_strided_slice %7 {offsets = [0, 72], sizes = [8, 8], strides = [1, 1]} : vector<8x96xf32> to vector<8x8xf32>
    %39 = arith.truncf %38 : vector<8x8xf32> to vector<8x8xbf16>
    %cst_14 = arith.constant dense<0.000000e+00> : vector<8x8xf32>
    %40 = tpu.matmul %35, %37, %cst_14 {dimension_numbers = #tpu.dot_dimension_numbers<[1], [1], [0], [0], [0, 0, 1, 0], [], []>} : vector<8x8xbf16>, vector<8x8xbf16>, vector<8x8xf32> -> vector<8x8xf32>
    %cst_15 = arith.constant 0.353553385 : f32
    %41 = vector.broadcast %cst_15 : f32 to vector<8x8xf32>
    %42 = arith.mulf %40, %41 : vector<8x8xf32>
    %43 = arith.addf %42, %11 : vector<8x8xf32>
    %cst_16 = arith.constant dense<0xFF800000> : vector<8xf32>
    %44 = vector.multi_reduction <maximumf>, %43, %cst_16 [1] : vector<8x8xf32> to vector<8xf32>
    %45 = vector.shape_cast %44 : vector<8xf32> to vector<8x1xf32>
    %46 = vector.broadcast %45 : vector<8x1xf32> to vector<8x8xf32>
    %47 = arith.subf %43, %46 : vector<8x8xf32>
    %48 = math.exp %47 : vector<8x8xf32>
    %cst_17 = arith.constant dense<0.000000e+00> : vector<8xf32>
    %49 = vector.multi_reduction <add>, %48, %cst_17 [1] : vector<8x8xf32> to vector<8xf32>
    %50 = vector.shape_cast %49 : vector<8xf32> to vector<8x1xf32>
    %51 = tpu.reciprocal %50 {approx = true} : vector<8x1xf32> -> vector<8x1xf32>
    %52 = vector.broadcast %51 : vector<8x1xf32> to vector<8x8xf32>
    %53 = arith.mulf %48, %52 : vector<8x8xf32>
    %54 = arith.truncf %53 : vector<8x8xf32> to vector<8x8xbf16>
    %cst_18 = arith.constant dense<0.000000e+00> : vector<8x8xf32>
    %55 = tpu.matmul %54, %39, %cst_18 {dimension_numbers = #tpu.dot_dimension_numbers<[1], [0], [0], [1], [0, 0, 1, 1], [], []>} : vector<8x8xbf16>, vector<8x8xbf16>, vector<8x8xf32> -> vector<8x8xf32>
    %56 = vector.extract_strided_slice %7 {offsets = [0, 16], sizes = [8, 8], strides = [1, 1]} : vector<8x96xf32> to vector<8x8xf32>
    %57 = arith.truncf %56 : vector<8x8xf32> to vector<8x8xbf16>
    %58 = vector.extract_strided_slice %7 {offsets = [0, 48], sizes = [8, 8], strides = [1, 1]} : vector<8x96xf32> to vector<8x8xf32>
    %59 = arith.truncf %58 : vector<8x8xf32> to vector<8x8xbf16>
    %60 = vector.extract_strided_slice %7 {offsets = [0, 80], sizes = [8, 8], strides = [1, 1]} : vector<8x96xf32> to vector<8x8xf32>
    %61 = arith.truncf %60 : vector<8x8xf32> to vector<8x8xbf16>
    %cst_19 = arith.constant dense<0.000000e+00> : vector<8x8xf32>
    %62 = tpu.matmul %57, %59, %cst_19 {dimension_numbers = #tpu.dot_dimension_numbers<[1], [1], [0], [0], [0, 0, 1, 0], [], []>} : vector<8x8xbf16>, vector<8x8xbf16>, vector<8x8xf32> -> vector<8x8xf32>
    %cst_20 = arith.constant 0.353553385 : f32
    %63 = vector.broadcast %cst_20 : f32 to vector<8x8xf32>
    %64 = arith.mulf %62, %63 : vector<8x8xf32>
    %65 = arith.addf %64, %11 : vector<8x8xf32>
    %cst_21 = arith.constant dense<0xFF800000> : vector<8xf32>
    %66 = vector.multi_reduction <maximumf>, %65, %cst_21 [1] : vector<8x8xf32> to vector<8xf32>
    %67 = vector.shape_cast %66 : vector<8xf32> to vector<8x1xf32>
    %68 = vector.broadcast %67 : vector<8x1xf32> to vector<8x8xf32>
    %69 = arith.subf %65, %68 : vector<8x8xf32>
    %70 = math.exp %69 : vector<8x8xf32>
    %cst_22 = arith.constant dense<0.000000e+00> : vector<8xf32>
    %71 = vector.multi_reduction <add>, %70, %cst_22 [1] : vector<8x8xf32> to vector<8xf32>
    %72 = vector.shape_cast %71 : vector<8xf32> to vector<8x1xf32>
    %73 = tpu.reciprocal %72 {approx = true} : vector<8x1xf32> -> vector<8x1xf32>
    %74 = vector.broadcast %73 : vector<8x1xf32> to vector<8x8xf32>
    %75 = arith.mulf %70, %74 : vector<8x8xf32>
    %76 = arith.truncf %75 : vector<8x8xf32> to vector<8x8xbf16>
    %cst_23 = arith.constant dense<0.000000e+00> : vector<8x8xf32>
    %77 = tpu.matmul %76, %61, %cst_23 {dimension_numbers = #tpu.dot_dimension_numbers<[1], [0], [0], [1], [0, 0, 1, 1], [], []>} : vector<8x8xbf16>, vector<8x8xbf16>, vector<8x8xf32> -> vector<8x8xf32>
    %78 = vector.extract_strided_slice %7 {offsets = [0, 24], sizes = [8, 8], strides = [1, 1]} : vector<8x96xf32> to vector<8x8xf32>
    %79 = arith.truncf %78 : vector<8x8xf32> to vector<8x8xbf16>
    %80 = vector.extract_strided_slice %7 {offsets = [0, 56], sizes = [8, 8], strides = [1, 1]} : vector<8x96xf32> to vector<8x8xf32>
    %81 = arith.truncf %80 : vector<8x8xf32> to vector<8x8xbf16>
    %82 = vector.extract_strided_slice %7 {offsets = [0, 88], sizes = [8, 8], strides = [1, 1]} : vector<8x96xf32> to vector<8x8xf32>
    %83 = arith.truncf %82 : vector<8x8xf32> to vector<8x8xbf16>
    %cst_24 = arith.constant dense<0.000000e+00> : vector<8x8xf32>
    %84 = tpu.matmul %79, %81, %cst_24 {dimension_numbers = #tpu.dot_dimension_numbers<[1], [1], [0], [0], [0, 0, 1, 0], [], []>} : vector<8x8xbf16>, vector<8x8xbf16>, vector<8x8xf32> -> vector<8x8xf32>
    %cst_25 = arith.constant 0.353553385 : f32
    %85 = vector.broadcast %cst_25 : f32 to vector<8x8xf32>
    %86 = arith.mulf %84, %85 : vector<8x8xf32>
    %87 = arith.addf %86, %11 : vector<8x8xf32>
    %cst_26 = arith.constant dense<0xFF800000> : vector<8xf32>
    %88 = vector.multi_reduction <maximumf>, %87, %cst_26 [1] : vector<8x8xf32> to vector<8xf32>
    %89 = vector.shape_cast %88 : vector<8xf32> to vector<8x1xf32>
    %90 = vector.broadcast %89 : vector<8x1xf32> to vector<8x8xf32>
    %91 = arith.subf %87, %90 : vector<8x8xf32>
    %92 = math.exp %91 : vector<8x8xf32>
    %cst_27 = arith.constant dense<0.000000e+00> : vector<8xf32>
    %93 = vector.multi_reduction <add>, %92, %cst_27 [1] : vector<8x8xf32> to vector<8xf32>
    %94 = vector.shape_cast %93 : vector<8xf32> to vector<8x1xf32>
    %95 = tpu.reciprocal %94 {approx = true} : vector<8x1xf32> -> vector<8x1xf32>
    %96 = vector.broadcast %95 : vector<8x1xf32> to vector<8x8xf32>
    %97 = arith.mulf %92, %96 : vector<8x8xf32>
    %98 = arith.truncf %97 : vector<8x8xf32> to vector<8x8xbf16>
    %cst_28 = arith.constant dense<0.000000e+00> : vector<8x8xf32>
    %99 = tpu.matmul %98, %83, %cst_28 {dimension_numbers = #tpu.dot_dimension_numbers<[1], [0], [0], [1], [0, 0, 1, 1], [], []>} : vector<8x8xbf16>, vector<8x8xbf16>, vector<8x8xf32> -> vector<8x8xf32>
    %100 = tpu.concatenate %33, %55, %77, %99 in 1 : vector<8x8xf32>, vector<8x8xf32>, vector<8x8xf32>, vector<8x8xf32> -> vector<8x32xf32>
    %101 = arith.truncf %100 : vector<8x32xf32> to vector<8x32xbf16>
    %c0_29 = arith.constant 0 : index
    %c0_30 = arith.constant 0 : index
    %102 = vector.load %arg5[%c0_29, %c0_30] : memref<32x32xbf16, #tpu.memory_space<vmem>>, vector<32x32xbf16>
    %cst_31 = arith.constant dense<0.000000e+00> : vector<8x32xf32>
    %103 = tpu.matmul %101, %102, %cst_31 {dimension_numbers = #tpu.dot_dimension_numbers<[1], [0], [0], [1], [0, 0, 1, 1], [], []>} : vector<8x32xbf16>, vector<32x32xbf16>, vector<8x32xf32> -> vector<8x32xf32>
    %c0_32 = arith.constant 0 : index
    %c0_33 = arith.constant 0 : index
    %104 = vector.load %arg6[%c0_32, %c0_33] : memref<1x32xf32, #tpu.memory_space<vmem>>, vector<1x32xf32>
    %105 = vector.broadcast %104 : vector<1x32xf32> to vector<8x32xf32>
    %106 = arith.addf %103, %105 : vector<8x32xf32>
    %107 = arith.addf %1, %106 : vector<8x32xf32>
    %c0_34 = arith.constant 0 : index
    %c0_35 = arith.constant 0 : index
    %108 = vector.load %arg7[%c0_34, %c0_35] : memref<1x32xf32, #tpu.memory_space<vmem>>, vector<1x32xf32>
    %c0_36 = arith.constant 0 : index
    %c0_37 = arith.constant 0 : index
    %109 = vector.load %arg8[%c0_36, %c0_37] : memref<1x32xf32, #tpu.memory_space<vmem>>, vector<1x32xf32>
    %cst_38 = arith.constant dense<0.000000e+00> : vector<8xf32>
    %110 = vector.multi_reduction <add>, %107, %cst_38 [1] : vector<8x32xf32> to vector<8xf32>
    %111 = vector.shape_cast %110 : vector<8xf32> to vector<8x1xf32>
    %cst_39 = arith.constant 3.125000e-02 : f32
    %112 = vector.broadcast %cst_39 : f32 to vector<8x1xf32>
    %113 = arith.mulf %111, %112 : vector<8x1xf32>
    %114 = vector.broadcast %113 : vector<8x1xf32> to vector<8x32xf32>
    %115 = arith.subf %107, %114 : vector<8x32xf32>
    %116 = arith.mulf %115, %115 : vector<8x32xf32>
    %cst_40 = arith.constant dense<0.000000e+00> : vector<8xf32>
    %117 = vector.multi_reduction <add>, %116, %cst_40 [1] : vector<8x32xf32> to vector<8xf32>
    %118 = vector.shape_cast %117 : vector<8xf32> to vector<8x1xf32>
    %cst_41 = arith.constant 3.125000e-02 : f32
    %119 = vector.broadcast %cst_41 : f32 to vector<8x1xf32>
    %120 = arith.mulf %118, %119 : vector<8x1xf32>
    %cst_42 = arith.constant 9.99999974E-6 : f32
    %121 = vector.broadcast %cst_42 : f32 to vector<8x1xf32>
    %122 = arith.addf %120, %121 : vector<8x1xf32>
    %123 = math.rsqrt %122 : vector<8x1xf32>
    %124 = vector.broadcast %123 : vector<8x1xf32> to vector<8x32xf32>
    %125 = arith.mulf %115, %124 : vector<8x32xf32>
    %126 = vector.broadcast %108 : vector<1x32xf32> to vector<8x32xf32>
    %127 = arith.mulf %125, %126 : vector<8x32xf32>
    %128 = vector.broadcast %109 : vector<1x32xf32> to vector<8x32xf32>
    %129 = arith.addf %127, %128 : vector<8x32xf32>
    %c0_43 = arith.constant 0 : index
    %c0_44 = arith.constant 0 : index
    %c0_45 = arith.constant 0 : index
    %130 = vector.load %arg9[%c0_43, %c0_44, %c0_45] : memref<1x8x32xf32, #tpu.memory_space<vmem>>, vector<1x8x32xf32>
    %131 = vector.shape_cast %130 : vector<1x8x32xf32> to vector<8x32xf32>
    %132 = vector.shape_cast %129 : vector<8x32xf32> to vector<1x8x32xf32>
    tpu.vector_store %arg9[%c0_43, %c0_44, %c0_45], %132 {strides = array<i32>} : memref<1x8x32xf32, #tpu.memory_space<vmem>>, vector<1x8x32xf32>,
    return
  }
  func.func @transform_0(%arg0: i32) -> (i32, i32, i32) {
    %c0_i32 = arith.constant 0 : i32
    %c0_i32_0 = arith.constant 0 : i32
    %c0_i32_1 = arith.constant 0 : i32
    return %arg0, %c0_i32, %c0_i32_0 : i32, i32, i32
  }
  func.func @transform_1(%arg0: i32) -> (i32, i32, i32) {
    %c0_i32 = arith.constant 0 : i32
    %c0_i32_0 = arith.constant 0 : i32
    %c0_i32_1 = arith.constant 0 : i32
    return %arg0, %c0_i32, %c0_i32_0 : i32, i32, i32
  }
  func.func @transform_2(%arg0: i32) -> (i32, i32) {
    %c0_i32 = arith.constant 0 : i32
    %c0_i32_0 = arith.constant 0 : i32
    %c0_i32_1 = arith.constant 0 : i32
    return %c0_i32, %c0_i32_0 : i32, i32
  }
  func.func @transform_3(%arg0: i32) -> (i32, i32) {
    %c0_i32 = arith.constant 0 : i32
    %c0_i32_0 = arith.constant 0 : i32
    %c0_i32_1 = arith.constant 0 : i32
    return %c0_i32, %c0_i32_0 : i32, i32
  }
  func.func @transform_4(%arg0: i32) -> (i32, i32) {
    %c0_i32 = arith.constant 0 : i32
    %c0_i32_0 = arith.constant 0 : i32
    %c0_i32_1 = arith.constant 0 : i32
    return %c0_i32, %c0_i32_0 : i32, i32
  }
  func.func @transform_5(%arg0: i32) -> (i32, i32) {
    %c0_i32 = arith.constant 0 : i32
    %c0_i32_0 = arith.constant 0 : i32
    %c0_i32_1 = arith.constant 0 : i32
    return %c0_i32, %c0_i32_0 : i32, i32
  }
  func.func @transform_6(%arg0: i32) -> (i32, i32) {
    %c0_i32 = arith.constant 0 : i32
    %c0_i32_0 = arith.constant 0 : i32
    %c0_i32_1 = arith.constant 0 : i32
    return %c0_i32, %c0_i32_0 : i32, i32
  }
  func.func @transform_7(%arg0: i32) -> (i32, i32) {
    %c0_i32 = arith.constant 0 : i32
    %c0_i32_0 = arith.constant 0 : i32
    %c0_i32_1 = arith.constant 0 : i32
    return %c0_i32, %c0_i32_0 : i32, i32
  }
  func.func @transform_8(%arg0: i32) -> (i32, i32, i32) {
    %c0_i32 = arith.constant 0 : i32
    %c0_i32_0 = arith.constant 0 : i32
    %c0_i32_1 = arith.constant 0 : i32
    return %arg0, %c0_i32, %c0_i32_0 : i32, i32, i32
  }
}

</mosaic_0001>

<bundles_post_ra>
// kernel: transformer_forward.9
= control target key start
LH: loop header
LB: loop body
LE: loop exit
PB: predicated region body
PF: predicated region fallthrough
CT: control target
= control target key end

     0   :  { %8 = vsyncpa [#allocation3], 0  ;;  %s518_s0 = inlined_call_operand.vmem [shape: f32[16,32], index: 0, kind: input, shape index: {}]   ;;  %s519_s1 = inlined_call_operand.vmem [shape: f32[1,32], index: 1, kind: input, shape index: {}]   ;;  %s520_s2 = inlined_call_operand.vmem [shape: f32[1,32], index: 2, kind: input, shape index: {}]   ;;  %s521_s3 = inlined_call_operand.hbm [shape: f32[16,32], index: 3, kind: output, shape index: {}]  }
   0x1   :  { %10 = vsyncpa [#allocation3 + $0x1], 0  ;;  %s409_s12 = smov 0   ;;  %s411_s13 = smov 0  }
   0x2   :  { %s413_s14 = smov 0   ;;  %s415_s15 = smov 0  }
   0x3 LB: > { %s430_s16 = sadd.s32 4294967295, %s386_s15   ;;  %s271_s17 = sadd.s32 4294967294, %s386_s15   ;;  %s386_s15 = sphi %s415_s15, %s527_s15   ;;  %s382_s14 = sphi %s413_s14, %s526_s14   ;;  %s378_s13 = sphi %s411_s13, %s525_s13   ;;  %s374_s12 = sphi %s409_s12, %s524_s12  }
   0x4   : > { %s434_s18 = sadd.s32 1, %s386_s15   ;;  %s91_s19 = sadd.s32 1, %s382_s14 }
   0x5   : > { %s88_s20 = ssub.s32 %s386_s15, %s434_s18  ;;  %p101_p0 = scmp.ne.s32.totalorder %s382_s14, %s378_s13 }
   0x6   : > { %p89_p1 = scmp.eq.s32.totalorder %s88_s20, 0  ;;  %p102_p2 = scmp.eq.s32.totalorder %s430_s16, 1 }
   0x7   : > { %p107_p3 = scmp.ne.s32.totalorder %s378_s13, %s374_s12  ;;  %p108_p4 = scmp.eq.s32.totalorder %s271_s17, 1 }
   0x8   : > { %s445_s21 = scalar_select %p89_p1, %s382_s14, %s91_s19  }
   0x9   : > { %p447_p5 = por %p102_p2, %p101_p0  ;;  %p451_p6 = por %p108_p4, %p107_p3 }
   0xa   : > { %p274_p7 = scmp.ge.s32.totalorder %s386_s15, 1  ;;  %p139_p8 = scmp.lt.s32.totalorder %s386_s15, 3 }
   0xc   : > { %p140_p9 = pnand %p274_p7, %p139_p8 }
   0xd   : > { %p162_p10 = scmp.lt.s32.totalorder (!%p140_p9), %s430_s16, 1  ;;  %vm169_vm0 = vcmask (!%p140_p9), 261120   ;;  %s159_s29 = sand.u32 (!%p140_p9), 1, %s378_s13   ;;  %v277_v11 = vld [vmem:[%s519_s1] ss:$0 sm:$0xff] (!%p140_p9) }
   0xe   : > { %143 = sbr.rel (%p140_p9) target bundleno = 353 (0x161), region = 32  ;;  %s275_s30 = sshll.u32 (!%p140_p9), %s159_s29, 3  ;;  %v278_v13 = vld [vmem:[%s520_s2] ss:$0 sm:$0xff] (!%p140_p9) }
   0xf   : > { %s280_s8 = sshll.u32 (!%p140_p9), %s430_s16, 7  ;;  %s161_s9 = scalar_lea.vmem (!%p140_p9), [#allocation2], %s275_s30 }
  0x10   : > { %s212_s10 = sshll.u32 (!%p140_p9), %s161_s9, 4  ;;  %s475_s19 = scalar_lea.hbm (!%p140_p9), %s521_s3, %s280_s8  ;;  %s477_s10 = int_to_ptr.vmem [resolvable:$true] %s212_s10 }
  0x11   : > { %s199_s20 = scalar_lea.sflag (!%p140_p9), [#allocation3], %s159_s29 }
  0x15   : > { %s163_s24 = scalar_select %p162_p10, %s430_s16, 1 }
  0x16   : > { %s388_s16 = smov [#allocation2]  }
  0x17   : > { %s276_s25 = sshll.u32 %s163_s24, 3  ;;  %s324_s24 = scalar_lea.vmem %s477_s10, 128 }
  0x18   : > { %s165_s28 = scalar_lea.vmem %s518_s0, %s276_s25  ;;  %p325_p11 = scmp.ne.s32.totalorder %s477_s10, %s324_s24 }
  0x19   : > { %v166_v0 = vld [vmem:[%s165_s28] sm:$0xff]  ;;  %s328_s25 = sshll.u32 %s388_s16, 4  ;;  %s329_s25 = int_to_ptr.vmem [resolvable:$false] %s328_s25 }
  0x1a   : > { %v170_v1 = vsel %vm169_vm0, %v166_v0, 0.0  ;;  %p326_p12 = pnand %p325_p11, %p447_p5  ;;  %s330_s26 = scalar_lea.vmem %s329_s25, 256 }
  0x1b   : > { %171 = vadd.xlane.f32.xlu0 %v170_v1  ;;  %p331_p0 = scmp.lt.s32.totalorder %s477_s10, %s329_s25  ;;  %p332_p1 = scmp.lt.s32.totalorder %s330_s26, %s324_s24 }
  0x1c   : > { %p327_p13 = pneg %p326_p12 }
  0x1d   : > { %p333_p2 = por %p332_p1, %p331_p0 }
  0x1f   : > { %p334_p3 = pnand %p333_p2, %p327_p13 }
  0xa8   : > { %v172_v2 = vpop.xlane.xlu0 %171 }
  0xa9   : > { %v173_v3 = vmul.f32 0.03125, %v172_v2 }
  0xab   : > { %v174_v4 = vsub.f32 %v166_v0, %v173_v3 }
  0xad   : > { %v175_v5 = vmul.f32 %v174_v4, %v174_v4 }
  0xaf   : > { %v176_v6 = vsel %vm169_vm0, %v175_v5, 0.0 }
  0xb0   : > { %177 = vadd.xlane.f32.xlu0 %v176_v6 }
 0x13d   : > { %v178_v7 = vpop.xlane.xlu0 %177 }
 0x13e   : > { %v179_v8 = vmul.f32 0.03125, %v178_v7 }
 0x140   : > { %v180_v9 = vadd.f32 1e-05, %v179_v8 }
 0x142   : > { %322 = vrsqrt.f32 %v180_v9 }
 0x14c   : > { %v323_v10 = vpop.eup %322 }
 0x14d   : > { %v182_v12 = vmul.f32 %v323_v10, %v174_v4 }
 0x14f   : > { %v189_v14 = vmul.f32 %v277_v11, %v182_v12 }
 0x151   : > { %v196_v15 = vadd.f32 %v278_v13, %v189_v14 }
 0x153   : > { %197 = vst.msk [vmem:[%s161_s9] sm:$0xff] %vm169_vm0, %v196_v15 }
 0x154   : > { %337 = shalt.err (!%p334_p3)
}
 0x155   : > { %s338_s27 = scalar_lea.hbm %s475_s19, 128  ;;  %s342_s30 = scalar_lea.hbm %s521_s3, 256 }
 0x156   : > { %p339_p4 = scmp.ne.s32.totalorder %s475_s19, %s338_s27  ;;  %p343_p9 = scmp.lt.u32.totalorder %s475_s19, %s521_s3 }
 0x157   : > { %p344_p10 = scmp.lt.u32.totalorder %s342_s30, %s338_s27  ;;  %p346_p12 = scmp.lt.u32.totalorder %s338_s27, %s475_s19 }
 0x158   : > { %p340_p7 = pnand %p339_p4, %p447_p5 }
 0x159   : > { %p345_p11 = por %p344_p10, %p343_p9 }
 0x15a   : > { %p341_p8 = pneg %p340_p7 }
 0x15b   : > { %p347_p13 = por %p346_p12, %p345_p11 }
 0x15d   : > { %p348_p0 = pnand %p347_p13, %p341_p8 }
 0x15f   : > { %351 = shalt.err (!%p348_p0)
}
 0x160   : > { %283 = dma.vmem_to_hbm [thread:$0]  (%p447_p5), %s477_s10, 128, %s475_s19, %s199_s20  }
 0x161 PF: > { %p289_p1 = scmp.ge.s32.totalorder %s386_s15, 2  ;;  %s224_s6 = sand.u32 1, %s374_s12  }
 0x162   : > { %s225_s7 = scalar_lea.sflag [#allocation3], %s224_s6 }
 0x163   : > { %p286_p2 = pnand %p289_p1, %p451_p6 }
 0x165   : > { %369 = dma.done.wait (!%p286_p2), %s225_s7, 128  }
 0x166   : > { %371 = vsyncadd (!%p286_p2), %s225_s7, 4294967168  ;;  %p13_p3 = scmp.ge.s32.totalorder %s434_s18, 4   ;;  %s524_s12 = smov %s378_s13 }
 0x167   : > { %s525_s13 = smov %s382_s14  ;;  %s526_s14 = smov %s445_s21 }
 0x168   : > { %s527_s15 = smov %s434_s18  ;;  %15 = sbr.rel (!%p13_p3) target bundleno = 3 (0x3), region = 67 }
 0x16f   :  { %230 = vsyncpa [#allocation3], 1 }
 0x170   :  { %232 = vsyncpa [#allocation3 + $0x1], 1 }

// kernel: transformer_forward.6
= control target key start
LH: loop header
LB: loop body
LE: loop exit
PB: predicated region body
PF: predicated region fallthrough
CT: control target
= control target key end

     0   :  { %s677_s24 = smov 0   ;;  %s747_s0 = inlined_call_operand.vmem [shape: f32[16,32], index: 0, kind: input, shape index: {}]   ;;  %s748_s1 = inlined_call_operand.vmem [shape: bf16[32,128], index: 1, kind: input, shape index: {}]   ;;  %s749_s2 = inlined_call_operand.vmem [shape: f32[1,128], index: 2, kind: input, shape index: {}]   ;;  %s750_s3 = inlined_call_operand.vmem [shape: bf16[128,32], index: 3, kind: input, shape index: {}]   ;;  %s751_s4 = inlined_call_operand.vmem [shape: f32[1,32], index: 4, kind: input, shape index: {}]   ;;  %s752_s5 = inlined_call_operand.vmem [shape: f32[1,32], index: 5, kind: input, shape index: {}]   ;;  %s753_s6 = inlined_call_operand.vmem [shape: f32[1,32], index: 6, kind: input, shape index: {}]   ;;  %s754_s7 = inlined_call_operand.vmem [shape: f32[16,32], index: 7, kind: output, shape index: {}]  }
   0x1 LB: > { %s541_s25 = sadd.s32 4294967295, %s633_s24   ;;  %p545_p0 = scmp.ge.s32.totalorder %s633_s24, 1  ;;  %s633_s24 = sphi %s677_s24, %s17_s24  }
   0x2   : > { %p236_p1 = scmp.lt.s32.totalorder %s633_s24, 3 }
   0x4   : > { %p237_p2 = pnand %p545_p0, %p236_p1 }
   0x5   : > { %v615_v0 = vld [vmem:[%s748_s1] sm:$0xff] (!%p237_p2)   ;;  %v635_v1 = vmov (!%p237_p2), 0.0   ;;  %v616_v2 = vld [vmem:[%s748_s1 + $0x8] sm:$0xff] (!%p237_p2)   ;;  %vm636_vm0 = vmmov (!%p237_p2), 0   ;;  %p266_p3 = scmp.lt.s32.totalorder (!%p237_p2), %s541_s25, 1  ;;  %vm300_vm1 = vcmask (!%p237_p2), 261120  }
   0x6   : > { %240 = sbr.rel (%p237_p2) target bundleno = 767 (0x2ff), region = 48  ;;  %577 = vmatprep.subr.bf16.mxu0 (!%p237_p2), %v635_v1  ;;  %585 = vmatprep.subr.bf16.mxu1 (!%p237_p2), %v635_v1  ;;  %v617_v3 = vld [vmem:[%s750_s3] sm:$0xff] (!%p237_p2)   ;;  %v618_v4 = vld [vmem:[%s750_s3 + $0x8] sm:$0xff] (!%p237_p2)   ;;  %v619_v6 = vld [vmem:[%s750_s3 + $0x10] sm:$0xff] (!%p237_p2)  }
   0x7   : > { %578 = vmatpush3.bf16.msra.mxu0 (!%p237_p2), %v615_v0  ;;  %581 = vmatprep.mubr.msk.bf16.mxu0 (!%p237_p2), %vm636_vm0, %v635_v1  ;;  %v620_v8 = vld [vmem:[%s750_s3 + $0x18] sm:$0xff] (!%p237_p2)   ;;  %v621_v9 = vld [vmem:[%s750_s3 + $0x20] sm:$0xff] (!%p237_p2)   ;;  %v622_v10 = vld [vmem:[%s750_s3 + $0x28] sm:$0xff] (!%p237_p2)  }
   0x8   : > { %579 = vmatprep.subr.bf16.mxu0 (!%p237_p2), %v635_v1  ;;  %601 = vmatprep.mubr.msk.bf16.mxu1 (!%p237_p2), %vm636_vm0, %v635_v1  ;;  %v623_v11 = vld [vmem:[%s750_s3 + $0x30] sm:$0xff] (!%p237_p2)   ;;  %v624_v12 = vld [vmem:[%s750_s3 + $0x38] sm:$0xff] (!%p237_p2)   ;;  %v548_v13 = vld [vmem:[%s749_s2] ss:$0 sm:$0xff] (!%p237_p2) }
   0x9   : > { %586 = vmatpush3.bf16.msra.mxu1 (!%p237_p2), %v617_v3  ;;  %v552_v21 = vld [vmem:[%s751_s4] ss:$0 sm:$0xff] (!%p237_p2) }
   0xa   : > { %587 = vmatprep.subr.bf16.mxu1 (!%p237_p2), %v635_v1  ;;  %v561_v38 = vld [vmem:[%s752_s5] ss:$0 sm:$0xff] (!%p237_p2) }
   0xb   : > { %580 = vmatpush3.bf16.msra.mxu0 (!%p237_p2), %v616_v2  ;;  %v562_v40 = vld [vmem:[%s753_s6] ss:$0 sm:$0xff] (!%p237_p2) }
   0xd   : > { %s756_s25 = smov (!%p266_p3, %s541_s25), 1  ;;  %588 = vmatpush3.bf16.msra.mxu1 %v618_v4 }
   0xe   : > { %s546_s11 = sshll.u32 %s756_s25, 3  ;;  %589 = vmatprep.subr.bf16.mxu1 %v635_v1 }
   0xf   : > { %s269_s14 = scalar_lea.vmem %s747_s0, %s546_s11  ;;  %s273_s17 = scalar_lea.vmem %s754_s7, %s546_s11 }
  0x10   : > { %v275_v5 = vld [vmem:[%s269_s14] sm:$0xff] }
  0x11   : > { %v276_v7 = vpack.c.bf16 %v275_v5, %v275_v5  ;;  %590 = vmatpush3.bf16.msra.mxu1 %v619_v6 }
  0x12   : > { %591 = vmatprep.subr.bf16.mxu1 %v635_v1 }
  0x13   : > { %582 = vmatmul.mubr.msk.bf16.vlgmr.msra.gmra.mrb[0].mxu0 %vm300_vm1, %v276_v7 }
  0x15   : > { %592 = vmatpush3.bf16.msra.mxu1 %v620_v8 }
  0x16   : > { %593 = vmatprep.subr.bf16.mxu1 %v635_v1 }
  0x19   : > { %594 = vmatpush3.bf16.msra.mxu1 %v621_v9 }
  0x1a   : > { %595 = vmatprep.subr.bf16.mxu1 %v635_v1 }
  0x1d   : > { %596 = vmatpush3.bf16.msra.mxu1 %v622_v10 }
  0x1e   : > { %597 = vmatprep.subr.bf16.mxu1 %v635_v1 }
  0x21   : > { %598 = vmatpush3.bf16.msra.mxu1 %v623_v11 }
  0x22   : > { %599 = vmatprep.subr.bf16.mxu1 %v635_v1 }
  0x25   : > { %600 = vmatpush3.bf16.msra.mxu1 %v624_v12 }
  0xe6   : > { %v338_v14 = vpop.f32.mrb[0].mxu0 }
  0xe7   : > { %v339_v15 = vadd.f32 %v548_v13, %v338_v14  ;;  %v583_v16 = vpop.f32.mrb[1].mxu0 }
  0xe8   : > { %v341_v17 = vpop.f32.mrb[2].mxu0 }
  0xe9   : > { %v344_v18 = vmax.f32 %v339_v15, 0.0  ;;  %v584_v19 = vpop.f32.mrb[3].mxu0 }
  0xeb   : > { %v345_v20 = vpack.c.bf16 %v344_v18, %v344_v18 }
  0xed   : > { %602 = vmatmul.mubr.bf16.vlgmr.msra.gmra.mrb[0].mxu1 %v345_v20 }
 0x1c0   : > { %v451_v22 = vpop.f32.mrb[0].mxu1 }
 0x1c1   : > { %v452_v23 = vadd.f32 %v552_v21, %v451_v22  ;;  %v603_v24 = vpop.f32.mrb[1].mxu1 }
 0x1c2   : > { %v454_v25 = vpop.f32.mrb[2].mxu1 }
 0x1c3   : > { %v604_v26 = vpop.f32.mrb[3].mxu1  ;;  %v457_v27 = vadd.f32 %v452_v23, %v275_v5 }
 0x1c5   : > { %v460_v28 = vsel %vm300_vm1, %v457_v27, 0.0 }
 0x1c6   : > { %461 = vadd.xlane.f32.xlu0 %v460_v28 }
 0x253   : > { %v462_v29 = vpop.xlane.xlu0 %461 }
 0x254   : > { %v463_v30 = vmul.f32 0.03125, %v462_v29 }
 0x256   : > { %v464_v31 = vsub.f32 %v457_v27, %v463_v30 }
 0x258   : > { %v465_v32 = vmul.f32 %v464_v31, %v464_v31 }
 0x25a   : > { %v466_v33 = vsel %vm300_vm1, %v465_v32, 0.0 }
 0x25b   : > { %467 = vadd.xlane.f32.xlu0 %v466_v33 }
 0x2e8   : > { %v468_v34 = vpop.xlane.xlu0 %467 }
 0x2e9   : > { %v469_v35 = vmul.f32 0.03125, %v468_v34 }
 0x2eb   : > { %v470_v36 = vadd.f32 1e-05, %v469_v35 }
 0x2ed   : > { %625 = vrsqrt.f32 %v470_v36 }
 0x2f7   : > { %v626_v37 = vpop.eup %625 }
 0x2f8   : > { %v472_v39 = vmul.f32 %v626_v37, %v464_v31 }
 0x2fa   : > { %v479_v41 = vmul.f32 %v561_v38, %v472_v39 }
 0x2fc   : > { %v486_v42 = vadd.f32 %v562_v40, %v479_v41 }
 0x2fe   : > { %487 = vst.msk [vmem:[%s273_s17] sm:$0xff] %vm300_vm1, %v486_v42 }
 0x2ff PF: > { %s17_s24 = sadd.s32 1, %s633_s24  }
 0x300   : > { %p14_p4 = scmp.ge.s32.totalorder %s17_s24, 4  }
 0x302   :  { %16 = sbr.rel (!%p14_p4) target bundleno = 1 (0x1), region = 78 }

// kernel: transformer_forward.5
= control target key start
LH: loop header
LB: loop body
LE: loop exit
PB: predicated region body
PF: predicated region fallthrough
CT: control target
= control target key end

     0   :  { %13 = vsyncpa [#allocation3], 0  ;;  %s1784_s0 = inlined_call_operand.hbm [shape: f32[2,8,32], index: 0, kind: input, shape index: {}]   ;;  %s1785_s1 = inlined_call_operand.vmem [shape: f32[2,1,8], index: 1, kind: input, shape index: {}]   ;;  %s1786_s2 = inlined_call_operand.vmem [shape: bf16[32,96], index: 2, kind: input, shape index: {}]   ;;  %s1787_s3 = inlined_call_operand.vmem [shape: f32[1,96], index: 3, kind: input, shape index: {}]   ;;  %s1788_s4 = inlined_call_operand.vmem [shape: bf16[32,32], index: 4, kind: input, shape index: {}]   ;;  %s1789_s5 = inlined_call_operand.vmem [shape: f32[1,32], index: 5, kind: input, shape index: {}]   ;;  %s1790_s6 = inlined_call_operand.hbm [shape: f32[1,32], index: 6, kind: input, shape index: {}]   ;;  %s1791_s7 = inlined_call_operand.hbm [shape: f32[1,32], index: 7, kind: input, shape index: {}]   ;;  %s1792_s8 = inlined_call_operand.vmem [shape: f32[2,8,32], index: 8, kind: output, shape index: {}]  }
   0x1   :  { %15 = vsyncpa [#allocation3 + $0x1], 0 }
   0x2   :  { %16 = vsyncpa [#allocation5], 0  ;;  %s1502_s27 = smov 0   ;;  %s1504_s28 = smov 0  }
   0x3   :  { %s1506_s29 = smov 0   ;;  %s1508_s30 = smov 0  }
   0x4 LB: > { %s1521_s9 = sadd.s32 4294967295, %s1436_s30   ;;  %p42_p0 = scmp.ne.s32.totalorder %s1428_s28, %s1424_s27  ;;  %s1436_s30 = sphi %s1508_s30, %s1807_s30   ;;  %s1432_s29 = sphi %s1506_s29, %s1806_s29   ;;  %s1428_s28 = sphi %s1504_s28, %s1805_s28   ;;  %s1424_s27 = sphi %s1502_s27, %s1804_s27  }
   0x5   : > { %p1793_p1 = scmp.eq.s32.totalorder %s1521_s9, 0  ;;  %p1096_p2 = scmp.ge.s32.totalorder %s1436_s30, 1 }
   0x6   : > { %p231_p3 = scmp.lt.s32.totalorder %s1436_s30, 3  ;;  %s1438_s12 = smov [#allocation4]  }
   0x7   : > { %p1529_p4 = por %p1793_p1, %p42_p0  ;;  %s256_s13 = sshll.u32 %s1438_s12, 4  ;;  %s257_s13 = int_to_ptr.vmem [resolvable:$true] %s256_s13 }
   0x8   : > { %p1533_p5 = pnand %p1096_p2, %p231_p3  ;;  %s1439_s14 = smov [#allocation6]  }
   0x9   : > { %s1796_s10 = scalar_select %p1529_p4, 1, 0 }
   0xa   : > { %s1797_s11 = scalar_select %p1533_p5, 1, 0 }
   0xb   : > { %p1224_p6 = pneg %p1533_p5  ;;  %s267_s15 = sshll.u32 %s1439_s14, 4  ;;  %s1545_s15 = int_to_ptr.vmem [resolvable:$true] %s267_s15 }
   0xc   : > { %s1548_s17 = sadd.s32 1, %s1436_s30   ;;  %s1312_s21 = scalar_lea.hbm %s1790_s6, 16 }
   0xd   : > { %p1541_p7 = pnand %p1224_p6, %p1793_p1  ;;  %s26_s18 = ssub.s32 %s1436_s30, %s1548_s17 }
   0xe   : > { %p1313_p8 = scmp.ne.s32.totalorder %s1790_s6, %s1312_s21  ;;  %p1319_p12 = scmp.lt.u32.totalorder %s1312_s21, %s1790_s6 }
   0xf   : > { %p1314_p9 = pneg %p1541_p7 }
  0x11   : > { %p1315_p10 = pnand %p1314_p9, %p1313_p8 }
  0x13   : > { %p1316_p11 = pneg %p1315_p10 }
  0x15   : > { %p1321_p13 = pnand %p1319_p12, %p1316_p11 }
  0x17   : > { %1324 = shalt.err (!%p1321_p13)
}
  0x18   : > { %s1325_s26 = scalar_lea.vmem %s257_s13, 16  ;;  %s1332_s27 = scalar_lea.vmem %s257_s13, 32 }
  0x19   : > { %p1326_p0 = scmp.ne.s32.totalorder %s257_s13, %s1325_s26  ;;  %p1333_p6 = scmp.lt.s32.totalorder %s257_s13, %s257_s13 }
  0x1a   : > { %p1334_p1 = scmp.lt.s32.totalorder %s1332_s27, %s1325_s26 }
  0x1b   : > { %p1328_p2 = pnand %p1326_p0, %p1314_p9 }
  0x1c   : > { %p1335_p4 = por %p1334_p1, %p1333_p6 }
  0x1d   : > { %p1329_p3 = pneg %p1328_p2 }
  0x1f   : > { %p1336_p5 = pnand %p1335_p4, %p1329_p3 }
  0x21   : > { %1339 = shalt.err (!%p1336_p5)
}
  0x22   : > { %1227 = dma.hbm_to_vmem [thread:$0]  (!%p1541_p7), %s1790_s6, 16, %s257_s13, [#allocation5]  }
  0x23   : > { %s1340_s21 = scalar_lea.hbm %s1791_s7, 16 }
  0x24   : > { %p1341_p8 = scmp.ne.s32.totalorder %s1791_s7, %s1340_s21  ;;  %p1347_p5 = scmp.lt.u32.totalorder %s1340_s21, %s1791_s7 }
  0x26   : > { %p1343_p1 = pnand %p1341_p8, %p1314_p9 }
  0x28   : > { %p1344_p4 = pneg %p1343_p1 }
  0x2a   : > { %p1349_p10 = pnand %p1347_p5, %p1344_p4 }
  0x2c   : > { %1352 = shalt.err (!%p1349_p10)
}
  0x2d   : > { %s1353_s13 = scalar_lea.vmem %s1545_s15, 16  ;;  %s1360_s26 = scalar_lea.vmem %s1545_s15, 32 }
  0x2e   : > { %p1354_p11 = scmp.ne.s32.totalorder %s1545_s15, %s1353_s13  ;;  %p1361_p0 = scmp.lt.s32.totalorder %s1545_s15, %s1545_s15 }
  0x2f   : > { %p1362_p2 = scmp.lt.s32.totalorder %s1360_s26, %s1353_s13 }
  0x30   : > { %p1356_p12 = pnand %p1354_p11, %p1314_p9 }
  0x31   : > { %p1363_p3 = por %p1362_p2, %p1361_p0 }
  0x32   : > { %p1357_p13 = pneg %p1356_p12 }
  0x34   : > { %p1364_p6 = pnand %p1363_p3, %p1357_p13 }
  0x36   : > { %1367 = shalt.err (!%p1364_p6)
}
  0x37   : > { %1230 = dma.hbm_to_vmem [thread:$0]  (!%p1541_p7), %s1791_s7, 16, %s1545_s15, [#allocation5]  }
  0x38   : > { %p27_p9 = scmp.eq.s32.totalorder %s26_s18, 0  ;;  %s29_s14 = sadd.s32 1, %s1432_s29 }
  0x39   : > { %p36_p8 = scmp.ne.s32.totalorder %s1432_s29, %s1428_s28  ;;  %p37_p1 = scmp.eq.s32.totalorder %s1436_s30, 0 }
  0x3a   : > { %s1608_s16 = scalar_select %p27_p9, %s1432_s29, %s29_s14  }
  0x3b   : > { %p38_p4 = por %p37_p1, %p36_p8  ;;  %p1237_p5 = scmp.lt.s32.totalorder %s1436_s30, 2 }
  0x3c   : > { %s278_s19 = sand.u32 1, %s1432_s29   ;;  %s1101_s20 = sshll.u32 %s1436_s30, 7 }
  0x3d   : > { %s1100_s21 = sshll.u32 %s278_s19, 3  ;;  %s1616_s24 = scalar_lea.hbm %s1784_s0, %s1101_s20 }
  0x3e   : > { %s282_s15 = scalar_lea.vmem [#allocation2], %s1100_s21  ;;  %p1618_p7 = pnand %p1237_p5, %p38_p4 }
  0x3f   : > { %s289_s18 = sshll.u32 %s282_s15, 4  ;;  %s279_s30 = scalar_lea.sflag [#allocation3], %s278_s19  ;;  %s1622_s18 = int_to_ptr.vmem [resolvable:$true] %s289_s18 }
  0x40   : > { %s1368_s13 = scalar_lea.hbm %s1616_s24, 128  ;;  %p1370_p11 = pneg %p1618_p7 }
  0x41   : > { %p1369_p10 = scmp.ne.s32.totalorder %s1616_s24, %s1368_s13  ;;  %s1373_s12 = scalar_lea.hbm %s1784_s0, 256 }
  0x42   : > { %p1374_p0 = scmp.lt.u32.totalorder %s1616_s24, %s1784_s0  ;;  %p1375_p2 = scmp.lt.u32.totalorder %s1373_s12, %s1368_s13 }
  0x43   : > { %p1371_p12 = pnand %p1370_p11, %p1369_p10  ;;  %p1377_p6 = scmp.lt.u32.totalorder %s1368_s13, %s1616_s24 }
  0x44   : > { %p1376_p3 = por %p1375_p2, %p1374_p0 }
  0x45   : > { %p1372_p13 = pneg %p1371_p12 }
  0x46   : > { %p1378_p9 = por %p1377_p6, %p1376_p3 }
  0x48   : > { %p1379_p8 = pnand %p1378_p9, %p1372_p13 }
  0x4a   : > { %1382 = shalt.err (!%p1379_p8)
}
  0x4b   : > { %s1383_s19 = scalar_lea.vmem %s1622_s18, 128  ;;  %s1440_s21 = smov [#allocation2]  }
  0x4c   : > { %p1384_p1 = scmp.ne.s32.totalorder %s1622_s18, %s1383_s19  ;;  %s1388_s22 = sshll.u32 %s1440_s21, 4  ;;  %s1389_s22 = int_to_ptr.vmem [resolvable:$false] %s1388_s22 }
  0x4d   : > { %s1390_s23 = scalar_lea.vmem %s1389_s22, 256  ;;  %p1391_p10 = scmp.lt.s32.totalorder %s1622_s18, %s1389_s22 }
  0x4e   : > { %p1386_p4 = pnand %p1384_p1, %p1370_p11  ;;  %p1392_p12 = scmp.lt.s32.totalorder %s1390_s23, %s1383_s19 }
  0x50   : > { %p1387_p5 = pneg %p1386_p4  ;;  %p1393_p0 = por %p1392_p12, %p1391_p10 }
  0x52   : > { %p1394_p2 = pnand %p1393_p0, %p1387_p5 }
  0x54   : > { %1397 = shalt.err (!%p1394_p2)
}
  0x55   : > { %1234 = dma.hbm_to_vmem [thread:$0]  (!%p1618_p7), %s1616_s24, 128, %s1622_s18, %s279_s30  }
  0x56   : > { %p1800_p13 = scmp.ne.s32.totalorder %s1797_s11, 0 }
  0x57   : > { %s306_s15 = sand.u32 (!%p1800_p13), 1, %s1428_s28   ;;  %p1801_p11 = scmp.ne.s32.totalorder (!%p1800_p13), %s1796_s10, 0 }
  0x58   : > { %304 = sbr.rel (%p1800_p13) target bundleno = 1902 (0x76e), region = 52  ;;  %s1103_s13 = sshll.u32 (!%p1800_p13), %s306_s15, 3 }
  0x59   : > { %s307_s26 = scalar_lea.sflag (!%p1800_p13), [#allocation3], %s306_s15  ;;  %s310_s27 = scalar_lea.vmem (!%p1800_p13), [#allocation2], %s1103_s13 }
  0x5f   : > { %1415 = dma.done.wait (%p1801_p11), %s307_s26, 128  }
  0x60   : > { %1417 = vsyncadd (%p1801_p11), %s307_s26, 4294967168  ;;  %p1802_p3 = scmp.eq.s32.totalorder %s1521_s9, 0 }
  0x62   : > { %1419 = dma.done.wait (%p1802_p3), [#allocation5], 32   ;;  %p1803_p6 = pmov %p1802_p3 }
  0x63   : > { %v1441_v0 = vmov 0.0   ;;  %vm1442_vm0 = vmmov 0   ;;  %v1290_v1 = vld [vmem:[%s1786_s2] sm:$0xff]   ;;  %v1291_v2 = vld [vmem:[%s1786_s2 + $0x8] sm:$0xff]   ;;  %vm386_vm1 = vcmask 261120   ;;  %s1443_s12 = smov 120  }
  0x64   : > { %1421 = vsyncadd (%p1803_p6), [#allocation5], 4294967264  ;;  %1150 = vmatprep.subr.bf16.mxu0 %v1441_v0  ;;  %1154 = vmatprep.mubr.msk.bf16.mxu0 %vm1442_vm0, %v1441_v0  ;;  %v1672_v3 = vld [vmem:[%s310_s27] sm:$0xff]  ;;  %s1444_s14 = smov 96   ;;  %s1445_s20 = smov 80   ;;  %vm441_vm2 = vcmask 64512  }
  0x65   : > { %1158 = vmatprep.subr.bf16.mxu1 %v1441_v0  ;;  %1160 = vmatprep.mubr.msk.bf16.mxu1 %vm1442_vm0, %v1441_v0  ;;  %v362_v4 = vpack.c.bf16 %v1672_v3, %v1672_v3  ;;  %v1107_v5 = vld [vmem:[%s1787_s3] ss:$0 sm:$0xff]  ;;  %s1446_s19 = smov 88   ;;  %s1447_s21 = smov 72   ;;  %vm507_vm3 = vcmask 1043456   ;;  %vm900_vm4 = vcmask 130048  }
  0x66   : > { %1151 = vmatpush3.bf16.msra.mxu0 %v1290_v1  ;;  %s1448_s22 = smov 112   ;;  %s1449_s23 = smov 104   ;;  %vm902_vm5 = vcmask 195584  }
  0x67   : > { %1152 = vmatprep.subr.bf16.mxu0 %v1441_v0  ;;  %p353_p7 = scmp.lt.s32.totalorder %s1521_s9, 1  ;;  %s1450_s27 = smov 56  }
  0x68   : > { %s1451_s10 = smov 64   ;;  %s1452_s11 = smov 40  }
  0x69   : > { %s1809_s9 = smov (!%p353_p7, %s1521_s9), 1  ;;  %s1453_s24 = smov 48  }
  0x6a   : > { %1153 = vmatpush3.bf16.msra.mxu0 %v1291_v2  ;;  %s355_s26 = scalar_lea.vmem %s1785_s1, %s1809_s9  ;;  %s1454_s18 = smov 8  }
  0x6b   : > { %1164 = vmatprep.subr.bf16.mxu0 %v1441_v0  ;;  %v1111_v24 = vld [vmem:[%s355_s26] ss:$0 sm:$0xff] }
  0x6d   : > { %1155 = vmatmul.mubr.msk.bf16.vlgmr.msra.gmra.mrb[0].mxu0 %vm386_vm1, %v362_v4 }
  0x6e   : > { %1166 = vmatprep.mubr.msk.bf16.mxu0 %vm1442_vm0, %v1441_v0 }
 0x140   : > { %v424_v6 = vpop.f32.mrb[0].mxu0 }
 0x141   : > { %v425_v7 = vadd.f32 %v1107_v5, %v424_v6  ;;  %v1156_v8 = vpop.f32.mrb[1].mxu0 }
 0x142   : > { %v427_v9 = vpop.f32.mrb[2].mxu0 }
 0x143   : > { %v1684_v10 = vpack.c.bf16 %v425_v7, %v425_v7  ;;  %v1157_v11 = vpop.f32.mrb[3].mxu0 }
 0x145   : > { %551 = vrot.lane.b32.xlu1 %v1684_v10, %s1443_s12  ;;  %439 = vrot.lane.b32.xlu0 %v1684_v10, %s1444_s14 }
 0x149   : > { %665 = vrot.lane.b32.xlu1 %v1684_v10, %s1445_s20  ;;  %553 = vrot.lane.b32.xlu0 %v1684_v10, %s1446_s19  ;;  %s1455_s20 = smov 16   ;;  %s1456_s19 = smov 24  }
 0x14d   : > { %777 = vrot.lane.b32.xlu1 %v1684_v10, %s1447_s21  ;;  %663 = vrot.lane.b32.xlu0 %v1684_v10, %s1448_s22 }
 0x151   : > { %775 = vrot.lane.b32.xlu0 %v1684_v10, %s1449_s23  ;;  %s1106_s23 = sshll.u32 %s1809_s9, 3 }
 0x152   : > { %s359_s26 = scalar_lea.vmem %s1792_s8, %s1106_s23 }
 0x1b7   : > { %v440_v12 = vpop.permute.xlu0 %439  ;;  %v552_v15 = vpop.permute.xlu1 %551 }
 0x1b8   : > { %v446_v13 = vsel %vm441_vm2, %v440_v12, 0 }
 0x1b9   : > { %1159 = vmatpush3.bf16.xpose.msra.mxu1 %v446_v13 }
 0x1ba   : > { %1170 = vmatprep.subr.bf16.mxu1 %v1441_v0 }
 0x1bb   : > { %v554_v14 = vpop.permute.xlu0 %553  ;;  %v666_v17 = vpop.permute.xlu1 %665 }
 0x1bc   : > { %v559_v16 = vsel %vm441_vm2, %v554_v14, 0  ;;  %v671_v18 = vsel %vm441_vm2, %v666_v17, 0 }
 0x1bf   : > { %v778_v19 = vpop.permute.xlu1 %777  ;;  %v664_v20 = vpop.permute.xlu0 %663 }
 0x1c0   : > { %1161 = vmatmul.mubr.msk.bf16.vlgmr.msra.gmra.mrb[0].mxu1 %vm441_vm2, %v1684_v10  ;;  %v783_v21 = vsel %vm441_vm2, %v778_v19, 0 }
 0x1c1   : > { %1171 = vmatpush3.bf16.xpose.msra.mxu1 %v559_v16  ;;  %1172 = vmatprep.mubr.msk.bf16.mxu1 %vm1442_vm0, %v1441_v0 }
 0x1c2   : > { %1182 = vmatprep.subr.bf16.mxu1 %v1441_v0 }
 0x1c3   : > { %v776_v22 = vpop.permute.xlu0 %775 }
 0x1c8   : > { %1173 = vmatmul.mubr.msk.bf16.vlgmr.msra.gmra.mrb[4].mxu1 %vm441_vm2, %v552_v15 }
 0x1c9   : > { %1183 = vmatpush3.bf16.xpose.msra.mxu1 %v671_v18  ;;  %1184 = vmatprep.mubr.msk.bf16.mxu1 %vm1442_vm0, %v1441_v0 }
 0x1ca   : > { %1194 = vmatprep.subr.bf16.mxu1 %v1441_v0 }
 0x1d0   : > { %1185 = vmatmul.mubr.msk.bf16.vlgmr.msra.gmra.mrb[8].mxu1 %vm441_vm2, %v664_v20 }
 0x1d1   : > { %1195 = vmatpush3.bf16.xpose.msra.mxu1 %v783_v21  ;;  %1196 = vmatprep.mubr.msk.bf16.mxu1 %vm1442_vm0, %v1441_v0 }
 0x1d2   : > { %1206 = vmatprep.subr.bf16.mxu1 %v1441_v0 }
 0x1d8   : > { %1197 = vmatmul.mubr.msk.bf16.vlgmr.msra.gmra.mrb[12].mxu1 %vm441_vm2, %v776_v22 }
 0x1d9   : > { %1210 = vmatprep.mubr.msk.bf16.mxu1 %vm1442_vm0, %v1441_v0 }
 0x293   : > { %v482_v23 = vpop.f32.mrb[0].mxu1 }
 0x294   : > { %v488_v25 = vmul.f32 0.35355338, %v482_v23  ;;  %v1162_v26 = vpop.f32.mrb[1].mxu1 }
 0x295   : > { %v485_v27 = vpop.f32.mrb[2].mxu1 }
 0x296   : > { %v1163_v28 = vpop.f32.mrb[3].mxu1  ;;  %v489_v29 = vadd.f32 %v1111_v24, %v488_v25 }
 0x298   : > { %v490_v30 = vsel %vm441_vm2, %v489_v29, -inf }
 0x299   : > { %491 = vmax.xlane.f32.xlu1 %v490_v30 }
 0x29b   : > { %v595_v31 = vpop.f32.mrb[4].mxu1 }
 0x29c   : > { %v601_v32 = vmul.f32 0.35355338, %v595_v31  ;;  %v1174_v33 = vpop.f32.mrb[5].mxu1 }
 0x29d   : > { %v598_v34 = vpop.f32.mrb[6].mxu1 }
 0x29e   : > { %v1175_v35 = vpop.f32.mrb[7].mxu1  ;;  %v602_v36 = vadd.f32 %v1111_v24, %v601_v32 }
 0x2a0   : > { %v603_v37 = vsel %vm441_vm2, %v602_v36, -inf }
 0x2a1   : > { %604 = vmax.xlane.f32.xlu0 %v603_v37 }
 0x2a3   : > { %v707_v38 = vpop.f32.mrb[8].mxu1 }
 0x2a4   : > { %v713_v39 = vmul.f32 0.35355338, %v707_v38  ;;  %v1186_v40 = vpop.f32.mrb[9].mxu1 }
 0x2a5   : > { %v710_v41 = vpop.f32.mrb[10].mxu1 }
 0x2a6   : > { %v1187_v42 = vpop.f32.mrb[11].mxu1  ;;  %v714_v43 = vadd.f32 %v1111_v24, %v713_v39 }
 0x2a7   : > { %v1292_v42 = vld [vmem:[%s1788_s4] sm:$0xff]  }
 0x2a8   : > { %v715_v44 = vsel %vm441_vm2, %v714_v43, -inf  ;;  %1207 = vmatpush3.bf16.msra.mxu1 %v1292_v42 }
 0x2a9   : > { %716 = vmax.xlane.f32.xlu0 %v715_v44  ;;  %1208 = vmatprep.subr.bf16.mxu1 %v1441_v0 }
 0x2ab   : > { %v819_v45 = vpop.f32.mrb[12].mxu1 }
 0x2ac   : > { %v825_v46 = vmul.f32 0.35355338, %v819_v45  ;;  %v1198_v47 = vpop.f32.mrb[13].mxu1 }
 0x2ad   : > { %v822_v48 = vpop.f32.mrb[14].mxu1 }
 0x2ae   : > { %v1199_v49 = vpop.f32.mrb[15].mxu1  ;;  %v826_v50 = vadd.f32 %v1111_v24, %v825_v46 }
 0x2b0   : > { %v827_v51 = vsel %vm441_vm2, %v826_v50, -inf }
 0x2b1   : > { %828 = vmax.xlane.f32.xlu1 %v827_v51 }
 0x326   : > { %v492_v52 = vpop.xlane.xlu1 %491 }
 0x327   : > { %v493_v53 = vsub.f32 %v489_v29, %v492_v52 }
 0x329   : > { %v494_v54 = vmul.f32 1.442695, %v493_v53 }
 0x32b   : > { %1294 = vpow2.f32 %v494_v54 }
 0x32e   : > { %v605_v55 = vpop.xlane.xlu0 %604 }
 0x32f   : > { %v606_v56 = vsub.f32 %v602_v36, %v605_v55 }
 0x331   : > { %v607_v57 = vmul.f32 1.442695, %v606_v56 }
 0x333   : > { %1296 = vpow2.f32 %v607_v57 }
 0x335   : > { %v1295_v58 = vpop.eup %1294 }
 0x336   : > { %v717_v59 = vpop.xlane.xlu0 %716  ;;  %v496_v60 = vsel %vm441_vm2, %v1295_v58, 0.0 }
 0x337   : > { %v718_v61 = vsub.f32 %v714_v43, %v717_v59  ;;  %497 = vadd.xlane.f32.xlu0 %v496_v60  ;;  %v1293_v43 = vld [vmem:[%s1788_s4 + $0x8] sm:$0xff]  }
 0x338   : > { %1209 = vmatpush3.bf16.msra.mxu1 %v1293_v43 }
 0x339   : > { %v719_v62 = vmul.f32 1.442695, %v718_v61 }
 0x33b   : > { %1298 = vpow2.f32 %v719_v62 }
 0x33d   : > { %v1297_v63 = vpop.eup %1296 }
 0x33e   : > { %v609_v1 = vsel %vm441_vm2, %v1297_v63, 0.0  ;;  %v829_v5 = vpop.xlane.xlu1 %828 }
 0x33f   : > { %610 = vadd.xlane.f32.xlu1 %v609_v1  ;;  %v830_v6 = vsub.f32 %v826_v50, %v829_v5 }
 0x341   : > { %v831_v7 = vmul.f32 1.442695, %v830_v6 }
 0x343   : > { %1300 = vpow2.f32 %v831_v7 }
 0x345   : > { %v1299_v2 = vpop.eup %1298 }
 0x346   : > { %v721_v4 = vsel %vm441_vm2, %v1299_v2, 0.0 }
 0x347   : > { %722 = vadd.xlane.f32.xlu0 %v721_v4 }
 0x34d   : > { %v1301_v8 = vpop.eup %1300 }
 0x34e   : > { %v833_v9 = vsel %vm441_vm2, %v1301_v8, 0.0 }
 0x350   : > { %615 = vrot.lane.b32.xlu1 %v1684_v10, %s1450_s27 }
 0x35d   : > { %502 = vrot.lane.b32.xlu0 %v1684_v10, %s1451_s10 }
 0x361   : > { %839 = vrot.lane.b32.xlu0 %v1684_v10, %s1452_s11 }
 0x374   : > { %834 = vadd.xlane.f32.xlu1 %v833_v9 }
 0x385   : > { %727 = vrot.lane.b32.xlu1 %v1684_v10, %s1453_s24 }
 0x3c4   : > { %v498_v11 = vpop.xlane.xlu0 %497 }
 0x3c5   : > { %1302 = vrcp.f32 %v498_v11 }
 0x3cc   : > { %v611_v12 = vpop.xlane.xlu1 %610 }
 0x3cd   : > { %1304 = vrcp.f32 %v611_v12 }
 0x3cf   : > { %v1303_v13 = vpop.eup %1302 }
 0x3d0   : > { %v500_v15 = vmul.f32 %v1303_v13, %v1295_v58  ;;  %v616_v18 = vpop.permute.xlu1 %615  ;;  %v1120_v58 = vld [vmem:[%s1789_s5] ss:$0 sm:$0xff] }
 0x3d1   : > { %v621_v21 = vsel %vm507_vm3, %v616_v18, 0 }
 0x3d2   : > { %v501_v19 = vpack.c.bf16 %v500_v15, %v500_v15 }
 0x3d4   : > { %v723_v14 = vpop.xlane.xlu0 %722 }
 0x3d5   : > { %1306 = vrcp.f32 %v723_v14  ;;  %v1124_v14 = vld [vmem:[#allocation4] ss:$0 sm:$0xff] }
 0x3d7   : > { %v1305_v20 = vpop.eup %1304 }
 0x3d8   : > { %v503_v16 = vpop.permute.xlu0 %502  ;;  %v613_v10 = vmul.f32 %v1305_v20, %v1297_v63 }
 0x3d9   : > { %v509_v17 = vsel %vm507_vm3, %v503_v16, 0  ;;  %v1125_v16 = vld [vmem:[#allocation6] ss:$0 sm:$0xff] }
 0x3da   : > { %1165 = vmatpush3.bf16.msra.mxu0 %v509_v17  ;;  %v614_v22 = vpack.c.bf16 %v613_v10, %v613_v10 }
 0x3db   : > { %1176 = vmatprep.subr.bf16.mxu0 %v1441_v0 }
 0x3dc   : > { %v840_v28 = vpop.permute.xlu0 %839 }
 0x3dd   : > { %1167 = vmatmul.mubr.msk.bf16.vlgmr.msra.gmra.mrb[4].mxu0 %vm441_vm2, %v501_v19  ;;  %v845_v30 = vsel %vm507_vm3, %v840_v28, 0 }
 0x3de   : > { %1177 = vmatpush3.bf16.msra.mxu0 %v621_v21  ;;  %1178 = vmatprep.mubr.msk.bf16.mxu0 %vm1442_vm0, %v1441_v0 }
 0x3df   : > { %1188 = vmatprep.subr.bf16.mxu0 %v1441_v0  ;;  %v1307_v23 = vpop.eup %1306 }
 0x3e0   : > { %v725_v25 = vmul.f32 %v1307_v23, %v1299_v2 }
 0x3e2   : > { %v726_v29 = vpack.c.bf16 %v725_v25, %v725_v25 }
 0x3e5   : > { %1179 = vmatmul.mubr.msk.bf16.vlgmr.msra.gmra.mrb[8].mxu0 %vm441_vm2, %v614_v22 }
 0x3e6   : > { %1190 = vmatprep.mubr.msk.bf16.mxu0 %vm1442_vm0, %v1441_v0 }
 0x401   : > { %v835_v24 = vpop.xlane.xlu1 %834 }
 0x402   : > { %1308 = vrcp.f32 %v835_v24 }
 0x405   : > { %v728_v26 = vpop.permute.xlu1 %727 }
 0x406   : > { %v733_v27 = vsel %vm507_vm3, %v728_v26, 0 }
 0x407   : > { %1189 = vmatpush3.bf16.msra.mxu0 %v733_v27 }
 0x408   : > { %1200 = vmatprep.subr.bf16.mxu0 %v1441_v0 }
 0x40a   : > { %1191 = vmatmul.mubr.msk.bf16.vlgmr.msra.gmra.mrb[12].mxu0 %vm441_vm2, %v726_v29 }
 0x40b   : > { %1201 = vmatpush3.bf16.msra.mxu0 %v845_v30  ;;  %1202 = vmatprep.mubr.msk.bf16.mxu0 %vm1442_vm0, %v1441_v0 }
 0x40c   : > { %v1309_v31 = vpop.eup %1308 }
 0x40d   : > { %v837_v32 = vmul.f32 %v1309_v31, %v1301_v8 }
 0x40f   : > { %v838_v33 = vpack.c.bf16 %v837_v32, %v837_v32 }
 0x412   : > { %1203 = vmatmul.mubr.msk.bf16.vlgmr.msra.gmra.mrb[16].mxu0 %vm441_vm2, %v838_v33 }
 0x4b0   : > { %v545_v34 = vpop.f32.mrb[4].mxu0 }
 0x4b1   : > { %v1168_v35 = vpop.f32.mrb[5].mxu0 }
 0x4b2   : > { %v548_v36 = vpop.f32.mrb[6].mxu0 }
 0x4b3   : > { %v1169_v37 = vpop.f32.mrb[7].mxu0 }
 0x4b8   : > { %v657_v38 = vpop.f32.mrb[8].mxu0 }
 0x4b9   : > { %888 = vrot.lane.b32.xlu1 %v657_v38, %s1454_s18  ;;  %v1180_v39 = vpop.f32.mrb[9].mxu0 }
 0x4ba   : > { %v660_v40 = vpop.f32.mrb[10].mxu0 }
 0x4bb   : > { %v1181_v41 = vpop.f32.mrb[11].mxu0 }
 0x4dd   : > { %v769_v44 = vpop.f32.mrb[12].mxu0 }
 0x4de   : > { %892 = vrot.lane.b32.xlu0 %v769_v44, %s1455_s20  ;;  %v1192_v45 = vpop.f32.mrb[13].mxu0 }
 0x4df   : > { %v772_v46 = vpop.f32.mrb[14].mxu0 }
 0x4e0   : > { %v1193_v47 = vpop.f32.mrb[15].mxu0 }
 0x4e5   : > { %v881_v48 = vpop.f32.mrb[16].mxu0 }
 0x4e6   : > { %896 = vrot.lane.b32.xlu1 %v881_v48, %s1456_s19  ;;  %v1204_v49 = vpop.f32.mrb[17].mxu0 }
 0x4e7   : > { %v884_v50 = vpop.f32.mrb[18].mxu0 }
 0x4e8   : > { %v1205_v51 = vpop.f32.mrb[19].mxu0 }
 0x52b   : > { %v889_v52 = vpop.permute.xlu1 %888 }
 0x52c   : > { %v899_v53 = vsel %vm441_vm2, %v545_v34, %v889_v52 }
 0x550   : > { %v893_v0 = vpop.permute.xlu0 %892 }
 0x551   : > { %v901_v54 = vsel %vm900_vm4, %v899_v53, %v893_v0 }
 0x558   : > { %v897_v55 = vpop.permute.xlu1 %896 }
 0x559   : > { %v903_v56 = vsel %vm902_vm5, %v901_v54, %v897_v55 }
 0x55a   : > { %v904_v57 = vpack.c.bf16 %v903_v56, %v903_v56 }
 0x55c   : > { %1211 = vmatmul.mubr.msk.bf16.vlgmr.msra.gmra.mrb[16].mxu1 %vm386_vm1, %v904_v57 }
 0x62f   : > { %v965_v59 = vpop.f32.mrb[16].mxu1 }
 0x630   : > { %v966_v60 = vadd.f32 %v1120_v58, %v965_v59  ;;  %v1212_v61 = vpop.f32.mrb[17].mxu1 }
 0x631   : > { %v968_v62 = vpop.f32.mrb[18].mxu1 }
 0x632   : > { %v1213_v63 = vpop.f32.mrb[19].mxu1  ;;  %v971_v1 = vadd.f32 %v966_v60, %v1672_v3 }
 0x634   : > { %v974_v2 = vsel %vm386_vm1, %v971_v1, 0.0 }
 0x635   : > { %975 = vadd.xlane.f32.xlu0 %v974_v2 }
 0x6c2   : > { %v976_v4 = vpop.xlane.xlu0 %975 }
 0x6c3   : > { %v977_v5 = vmul.f32 0.03125, %v976_v4 }
 0x6c5   : > { %v978_v6 = vsub.f32 %v971_v1, %v977_v5 }
 0x6c7   : > { %v979_v7 = vmul.f32 %v978_v6, %v978_v6 }
 0x6c9   : > { %v980_v8 = vsel %vm386_vm1, %v979_v7, 0.0 }
 0x6ca   : > { %981 = vadd.xlane.f32.xlu1 %v980_v8 }
 0x757   : > { %v982_v9 = vpop.xlane.xlu1 %981 }
 0x758   : > { %v983_v11 = vmul.f32 0.03125, %v982_v9 }
 0x75a   : > { %v984_v12 = vadd.f32 1e-05, %v983_v11 }
 0x75c   : > { %1310 = vrsqrt.f32 %v984_v12 }
 0x766   : > { %v1311_v13 = vpop.eup %1310 }
 0x767   : > { %v986_v15 = vmul.f32 %v1311_v13, %v978_v6 }
 0x769   : > { %v993_v3 = vmul.f32 %v1124_v14, %v986_v15 }
 0x76b   : > { %v1000_v17 = vadd.f32 %v1125_v16, %v993_v3 }
 0x76d   : > { %1001 = vst.msk [vmem:[%s359_s26] sm:$0xff] %vm386_vm1, %v1000_v17 }
 0x76e PF: > { %p19_p9 = scmp.ge.s32.totalorder %s1548_s17, 4   ;;  %s1804_s27 = smov %s1428_s28 }
 0x76f   : > { %s1805_s28 = smov %s1432_s29  ;;  %s1806_s29 = smov %s1608_s16 }
 0x770   : > { %s1807_s30 = smov %s1548_s17  ;;  %21 = sbr.rel (!%p19_p9) target bundleno = 4 (0x4), region = 103 }
 0x777   :  { %1021 = vsyncpa [#allocation3], 1 }
 0x778   :  { %1023 = vsyncpa [#allocation3 + $0x1], 1 }
 0x779   :  { %1024 = vsyncpa [#allocation5], 1 }

// kernel: transformer_forward.7
= control target key start
LH: loop header
LB: loop body
LE: loop exit
PB: predicated region body
PF: predicated region fallthrough
CT: control target
= control target key end

     0   :  { %s1248_s27 = smov 0   ;;  %s1381_s0 = inlined_call_operand.vmem [shape: f32[2,8,32], index: 0, kind: input, shape index: {}]   ;;  %s1382_s1 = inlined_call_operand.vmem [shape: f32[2,1,8], index: 1, kind: input, shape index: {}]   ;;  %s1383_s2 = inlined_call_operand.vmem [shape: bf16[32,96], index: 2, kind: input, shape index: {}]   ;;  %s1384_s3 = inlined_call_operand.vmem [shape: f32[1,96], index: 3, kind: input, shape index: {}]   ;;  %s1385_s4 = inlined_call_operand.vmem [shape: bf16[32,32], index: 4, kind: input, shape index: {}]   ;;  %s1386_s5 = inlined_call_operand.vmem [shape: f32[1,32], index: 5, kind: input, shape index: {}]   ;;  %s1387_s6 = inlined_call_operand.vmem [shape: f32[1,32], index: 6, kind: input, shape index: {}]   ;;  %s1388_s7 = inlined_call_operand.vmem [shape: f32[1,32], index: 7, kind: input, shape index: {}]   ;;  %s1389_s8 = inlined_call_operand.vmem [shape: f32[2,8,32], index: 8, kind: output, shape index: {}]  }
   0x1 LB: > { %s1019_s28 = sadd.s32 4294967295, %s1185_s27   ;;  %p1023_p0 = scmp.ge.s32.totalorder %s1185_s27, 1  ;;  %s1185_s27 = sphi %s1248_s27, %s18_s27  }
   0x2   : > { %p269_p1 = scmp.lt.s32.totalorder %s1185_s27, 3 }
   0x4   : > { %p270_p2 = pnand %p1023_p0, %p269_p1 }
   0x5   : > { %v1157_v0 = vld [vmem:[%s1383_s2] sm:$0xff] (!%p270_p2)   ;;  %v1187_v1 = vmov (!%p270_p2), 0.0   ;;  %v1158_v2 = vld [vmem:[%s1383_s2 + $0x8] sm:$0xff] (!%p270_p2)   ;;  %vm1188_vm0 = vmmov (!%p270_p2), 0   ;;  %p304_p3 = scmp.lt.s32.totalorder (!%p270_p2), %s1019_s28, 1  ;;  %vm341_vm1 = vcmask (!%p270_p2), 261120  }
   0x6   : > { %273 = sbr.rel (%p270_p2) target bundleno = 1812 (0x714), region = 52  ;;  %1069 = vmatprep.subr.bf16.mxu0 (!%p270_p2), %v1187_v1  ;;  %1077 = vmatprep.subr.bf16.mxu1 (!%p270_p2), %v1187_v1  ;;  %v1026_v5 = vld [vmem:[%s1384_s3] ss:$0 sm:$0xff] (!%p270_p2)  ;;  %s1189_s17 = smov (!%p270_p2), 120   ;;  %vm396_vm2 = vcmask (!%p270_p2), 64512   ;;  %vm462_vm3 = vcmask (!%p270_p2), 1043456  }
   0x7   : > { %1070 = vmatpush3.bf16.msra.mxu0 (!%p270_p2), %v1157_v0  ;;  %1073 = vmatprep.mubr.msk.bf16.mxu0 (!%p270_p2), %vm1188_vm0, %v1187_v1  ;;  %s1190_s18 = smov (!%p270_p2), 96   ;;  %s1191_s19 = smov (!%p270_p2), 80   ;;  %vm855_vm4 = vcmask (!%p270_p2), 130048   ;;  %vm857_vm5 = vcmask (!%p270_p2), 195584  }
   0x8   : > { %1071 = vmatprep.subr.bf16.mxu0 (!%p270_p2), %v1187_v1  ;;  %1079 = vmatprep.mubr.msk.bf16.mxu1 (!%p270_p2), %vm1188_vm0, %v1187_v1  ;;  %s1192_s20 = smov (!%p270_p2), 88   ;;  %s1193_s21 = smov (!%p270_p2), 72  }
   0x9   : > { %s1194_s22 = smov (!%p270_p2), 112   ;;  %s1195_s23 = smov (!%p270_p2), 104  }
   0xa   : > { %s1196_s29 = smov (!%p270_p2), 56   ;;  %s1197_s30 = smov (!%p270_p2), 64  }
   0xb   : > { %1072 = vmatpush3.bf16.msra.mxu0 (!%p270_p2), %v1158_v2  ;;  %s1198_s9 = smov (!%p270_p2), 40   ;;  %s1199_s10 = smov (!%p270_p2), 48  }
   0xc   : > { %1083 = vmatprep.subr.bf16.mxu0 (!%p270_p2), %v1187_v1  ;;  %s1200_s12 = smov (!%p270_p2), 8  }
   0xd   : > { %s1391_s28 = smov (!%p304_p3, %s1019_s28), 1 }
   0xe   : > { %s1024_s11 = sshll.u32 %s1391_s28, 3  ;;  %s310_s26 = scalar_lea.vmem %s1382_s1, %s1391_s28 }
   0xf   : > { %s307_s14 = scalar_lea.vmem %s1381_s0, %s1024_s11  ;;  %v1030_v24 = vld [vmem:[%s310_s26] ss:$0 sm:$0xff] }
  0x10   : > { %v1278_v3 = vld [vmem:[%s307_s14] sm:$0xff] }
  0x11   : > { %v317_v4 = vpack.c.bf16 %v1278_v3, %v1278_v3 }
  0x13   : > { %1074 = vmatmul.mubr.msk.bf16.vlgmr.msra.gmra.mrb[0].mxu0 %vm341_vm1, %v317_v4 }
  0x14   : > { %1085 = vmatprep.mubr.msk.bf16.mxu0 %vm1188_vm0, %v1187_v1 }
  0xe6   : > { %v379_v6 = vpop.f32.mrb[0].mxu0 }
  0xe7   : > { %v380_v7 = vadd.f32 %v1026_v5, %v379_v6  ;;  %v1075_v8 = vpop.f32.mrb[1].mxu0 }
  0xe8   : > { %v382_v9 = vpop.f32.mrb[2].mxu0 }
  0xe9   : > { %v1288_v10 = vpack.c.bf16 %v380_v7, %v380_v7  ;;  %v1076_v11 = vpop.f32.mrb[3].mxu0 }
  0xeb   : > { %506 = vrot.lane.b32.xlu1 %v1288_v10, %s1189_s17  ;;  %394 = vrot.lane.b32.xlu0 %v1288_v10, %s1190_s18  ;;  %s1201_s17 = smov 16   ;;  %s1202_s18 = smov 24  }
  0xef   : > { %620 = vrot.lane.b32.xlu1 %v1288_v10, %s1191_s19  ;;  %508 = vrot.lane.b32.xlu0 %v1288_v10, %s1192_s20 }
  0xf3   : > { %732 = vrot.lane.b32.xlu1 %v1288_v10, %s1193_s21  ;;  %618 = vrot.lane.b32.xlu0 %v1288_v10, %s1194_s22 }
  0xf7   : > { %730 = vrot.lane.b32.xlu0 %v1288_v10, %s1195_s23 }
 0x15d   : > { %v395_v12 = vpop.permute.xlu0 %394  ;;  %v507_v15 = vpop.permute.xlu1 %506 }
 0x15e   : > { %v401_v13 = vsel %vm396_vm2, %v395_v12, 0 }
 0x15f   : > { %1078 = vmatpush3.bf16.xpose.msra.mxu1 %v401_v13 }
 0x160   : > { %1089 = vmatprep.subr.bf16.mxu1 %v1187_v1 }
 0x161   : > { %v509_v14 = vpop.permute.xlu0 %508  ;;  %v621_v17 = vpop.permute.xlu1 %620 }
 0x162   : > { %v514_v16 = vsel %vm396_vm2, %v509_v14, 0  ;;  %v626_v18 = vsel %vm396_vm2, %v621_v17, 0 }
 0x165   : > { %v733_v19 = vpop.permute.xlu1 %732  ;;  %v619_v20 = vpop.permute.xlu0 %618 }
 0x166   : > { %1080 = vmatmul.mubr.msk.bf16.vlgmr.msra.gmra.mrb[0].mxu1 %vm396_vm2, %v1288_v10  ;;  %v738_v21 = vsel %vm396_vm2, %v733_v19, 0 }
 0x167   : > { %1090 = vmatpush3.bf16.xpose.msra.mxu1 %v514_v16  ;;  %1091 = vmatprep.mubr.msk.bf16.mxu1 %vm1188_vm0, %v1187_v1 }
 0x168   : > { %1101 = vmatprep.subr.bf16.mxu1 %v1187_v1 }
 0x169   : > { %v731_v22 = vpop.permute.xlu0 %730 }
 0x16e   : > { %1092 = vmatmul.mubr.msk.bf16.vlgmr.msra.gmra.mrb[4].mxu1 %vm396_vm2, %v507_v15 }
 0x16f   : > { %1102 = vmatpush3.bf16.xpose.msra.mxu1 %v626_v18  ;;  %1103 = vmatprep.mubr.msk.bf16.mxu1 %vm1188_vm0, %v1187_v1 }
 0x170   : > { %1113 = vmatprep.subr.bf16.mxu1 %v1187_v1 }
 0x176   : > { %1104 = vmatmul.mubr.msk.bf16.vlgmr.msra.gmra.mrb[8].mxu1 %vm396_vm2, %v619_v20 }
 0x177   : > { %1114 = vmatpush3.bf16.xpose.msra.mxu1 %v738_v21  ;;  %1115 = vmatprep.mubr.msk.bf16.mxu1 %vm1188_vm0, %v1187_v1 }
 0x178   : > { %1125 = vmatprep.subr.bf16.mxu1 %v1187_v1 }
 0x17e   : > { %1116 = vmatmul.mubr.msk.bf16.vlgmr.msra.gmra.mrb[12].mxu1 %vm396_vm2, %v731_v22 }
 0x17f   : > { %1129 = vmatprep.mubr.msk.bf16.mxu1 %vm1188_vm0, %v1187_v1 }
 0x239   : > { %v437_v23 = vpop.f32.mrb[0].mxu1 }
 0x23a   : > { %v443_v25 = vmul.f32 0.35355338, %v437_v23  ;;  %v1081_v26 = vpop.f32.mrb[1].mxu1 }
 0x23b   : > { %v440_v27 = vpop.f32.mrb[2].mxu1 }
 0x23c   : > { %v1082_v28 = vpop.f32.mrb[3].mxu1  ;;  %v444_v29 = vadd.f32 %v1030_v24, %v443_v25 }
 0x23e   : > { %v445_v30 = vsel %vm396_vm2, %v444_v29, -inf }
 0x23f   : > { %446 = vmax.xlane.f32.xlu1 %v445_v30 }
 0x241   : > { %v550_v31 = vpop.f32.mrb[4].mxu1 }
 0x242   : > { %v556_v32 = vmul.f32 0.35355338, %v550_v31  ;;  %v1093_v33 = vpop.f32.mrb[5].mxu1 }
 0x243   : > { %v553_v34 = vpop.f32.mrb[6].mxu1 }
 0x244   : > { %v1094_v35 = vpop.f32.mrb[7].mxu1  ;;  %v557_v36 = vadd.f32 %v1030_v24, %v556_v32 }
 0x246   : > { %v558_v37 = vsel %vm396_vm2, %v557_v36, -inf }
 0x247   : > { %559 = vmax.xlane.f32.xlu0 %v558_v37 }
 0x249   : > { %v662_v38 = vpop.f32.mrb[8].mxu1 }
 0x24a   : > { %v668_v39 = vmul.f32 0.35355338, %v662_v38  ;;  %v1105_v40 = vpop.f32.mrb[9].mxu1 }
 0x24b   : > { %v665_v41 = vpop.f32.mrb[10].mxu1 }
 0x24c   : > { %v1106_v42 = vpop.f32.mrb[11].mxu1  ;;  %v669_v43 = vadd.f32 %v1030_v24, %v668_v39 }
 0x24d   : > { %v1159_v42 = vld [vmem:[%s1385_s4] sm:$0xff]  }
 0x24e   : > { %v670_v44 = vsel %vm396_vm2, %v669_v43, -inf  ;;  %1126 = vmatpush3.bf16.msra.mxu1 %v1159_v42 }
 0x24f   : > { %671 = vmax.xlane.f32.xlu0 %v670_v44  ;;  %1127 = vmatprep.subr.bf16.mxu1 %v1187_v1 }
 0x251   : > { %v774_v45 = vpop.f32.mrb[12].mxu1 }
 0x252   : > { %v780_v46 = vmul.f32 0.35355338, %v774_v45  ;;  %v1117_v47 = vpop.f32.mrb[13].mxu1 }
 0x253   : > { %v777_v48 = vpop.f32.mrb[14].mxu1 }
 0x254   : > { %v1118_v49 = vpop.f32.mrb[15].mxu1  ;;  %v781_v50 = vadd.f32 %v1030_v24, %v780_v46 }
 0x256   : > { %v782_v51 = vsel %vm396_vm2, %v781_v50, -inf }
 0x257   : > { %783 = vmax.xlane.f32.xlu1 %v782_v51 }
 0x2cc   : > { %v447_v52 = vpop.xlane.xlu1 %446 }
 0x2cd   : > { %v448_v53 = vsub.f32 %v444_v29, %v447_v52 }
 0x2cf   : > { %v449_v54 = vmul.f32 1.442695, %v448_v53 }
 0x2d1   : > { %1161 = vpow2.f32 %v449_v54 }
 0x2d4   : > { %v560_v55 = vpop.xlane.xlu0 %559 }
 0x2d5   : > { %v561_v56 = vsub.f32 %v557_v36, %v560_v55 }
 0x2d7   : > { %v562_v57 = vmul.f32 1.442695, %v561_v56 }
 0x2d9   : > { %1163 = vpow2.f32 %v562_v57 }
 0x2db   : > { %v1162_v58 = vpop.eup %1161 }
 0x2dc   : > { %v672_v59 = vpop.xlane.xlu0 %671  ;;  %v451_v60 = vsel %vm396_vm2, %v1162_v58, 0.0 }
 0x2dd   : > { %v673_v61 = vsub.f32 %v669_v43, %v672_v59  ;;  %452 = vadd.xlane.f32.xlu0 %v451_v60  ;;  %v1160_v43 = vld [vmem:[%s1385_s4 + $0x8] sm:$0xff]  }
 0x2de   : > { %1128 = vmatpush3.bf16.msra.mxu1 %v1160_v43 }
 0x2df   : > { %v674_v62 = vmul.f32 1.442695, %v673_v61 }
 0x2e1   : > { %1165 = vpow2.f32 %v674_v62 }
 0x2e3   : > { %v1164_v63 = vpop.eup %1163 }
 0x2e4   : > { %v564_v0 = vsel %vm396_vm2, %v1164_v63, 0.0  ;;  %v784_v5 = vpop.xlane.xlu1 %783 }
 0x2e5   : > { %565 = vadd.xlane.f32.xlu1 %v564_v0  ;;  %v785_v6 = vsub.f32 %v781_v50, %v784_v5 }
 0x2e7   : > { %v786_v7 = vmul.f32 1.442695, %v785_v6 }
 0x2e9   : > { %1167 = vpow2.f32 %v786_v7 }
 0x2eb   : > { %v1166_v2 = vpop.eup %1165 }
 0x2ec   : > { %v676_v4 = vsel %vm396_vm2, %v1166_v2, 0.0 }
 0x2ed   : > { %677 = vadd.xlane.f32.xlu0 %v676_v4 }
 0x2f3   : > { %v1168_v8 = vpop.eup %1167 }
 0x2f4   : > { %v788_v9 = vsel %vm396_vm2, %v1168_v8, 0.0 }
 0x2f6   : > { %570 = vrot.lane.b32.xlu1 %v1288_v10, %s1196_s29  ;;  %s314_s29 = scalar_lea.vmem %s1389_s8, %s1024_s11 }
 0x303   : > { %457 = vrot.lane.b32.xlu0 %v1288_v10, %s1197_s30 }
 0x307   : > { %794 = vrot.lane.b32.xlu0 %v1288_v10, %s1198_s9 }
 0x31a   : > { %789 = vadd.xlane.f32.xlu1 %v788_v9 }
 0x32b   : > { %682 = vrot.lane.b32.xlu1 %v1288_v10, %s1199_s10 }
 0x36a   : > { %v453_v11 = vpop.xlane.xlu0 %452 }
 0x36b   : > { %1169 = vrcp.f32 %v453_v11 }
 0x372   : > { %v566_v12 = vpop.xlane.xlu1 %565 }
 0x373   : > { %1171 = vrcp.f32 %v566_v12 }
 0x375   : > { %v1170_v13 = vpop.eup %1169 }
 0x376   : > { %v455_v15 = vmul.f32 %v1170_v13, %v1162_v58  ;;  %v571_v18 = vpop.permute.xlu1 %570  ;;  %v1039_v58 = vld [vmem:[%s1386_s5] ss:$0 sm:$0xff] }
 0x377   : > { %v576_v21 = vsel %vm462_vm3, %v571_v18, 0 }
 0x378   : > { %v456_v19 = vpack.c.bf16 %v455_v15, %v455_v15  ;;  %v1044_v15 = vld [vmem:[%s1388_s7] ss:$0 sm:$0xff] }
 0x37a   : > { %v678_v14 = vpop.xlane.xlu0 %677 }
 0x37b   : > { %1173 = vrcp.f32 %v678_v14 }
 0x37d   : > { %v1172_v20 = vpop.eup %1171 }
 0x37e   : > { %v458_v16 = vpop.permute.xlu0 %457  ;;  %v568_v10 = vmul.f32 %v1172_v20, %v1164_v63 }
 0x37f   : > { %v464_v17 = vsel %vm462_vm3, %v458_v16, 0 }
 0x380   : > { %1084 = vmatpush3.bf16.msra.mxu0 %v464_v17  ;;  %v569_v22 = vpack.c.bf16 %v568_v10, %v568_v10 }
 0x381   : > { %1095 = vmatprep.subr.bf16.mxu0 %v1187_v1 }
 0x382   : > { %v795_v28 = vpop.permute.xlu0 %794 }
 0x383   : > { %1086 = vmatmul.mubr.msk.bf16.vlgmr.msra.gmra.mrb[4].mxu0 %vm396_vm2, %v456_v19  ;;  %v800_v30 = vsel %vm462_vm3, %v795_v28, 0 }
 0x384   : > { %1096 = vmatpush3.bf16.msra.mxu0 %v576_v21  ;;  %1097 = vmatprep.mubr.msk.bf16.mxu0 %vm1188_vm0, %v1187_v1 }
 0x385   : > { %1107 = vmatprep.subr.bf16.mxu0 %v1187_v1  ;;  %v1174_v23 = vpop.eup %1173 }
 0x386   : > { %v680_v25 = vmul.f32 %v1174_v23, %v1166_v2 }
 0x388   : > { %v681_v29 = vpack.c.bf16 %v680_v25, %v680_v25 }
 0x38b   : > { %1098 = vmatmul.mubr.msk.bf16.vlgmr.msra.gmra.mrb[8].mxu0 %vm396_vm2, %v569_v22 }
 0x38c   : > { %1109 = vmatprep.mubr.msk.bf16.mxu0 %vm1188_vm0, %v1187_v1 }
 0x3a7   : > { %v790_v24 = vpop.xlane.xlu1 %789 }
 0x3a8   : > { %1175 = vrcp.f32 %v790_v24 }
 0x3ab   : > { %v683_v26 = vpop.permute.xlu1 %682 }
 0x3ac   : > { %v688_v27 = vsel %vm462_vm3, %v683_v26, 0 }
 0x3ad   : > { %1108 = vmatpush3.bf16.msra.mxu0 %v688_v27 }
 0x3ae   : > { %1119 = vmatprep.subr.bf16.mxu0 %v1187_v1 }
 0x3b0   : > { %1110 = vmatmul.mubr.msk.bf16.vlgmr.msra.gmra.mrb[12].mxu0 %vm396_vm2, %v681_v29 }
 0x3b1   : > { %1120 = vmatpush3.bf16.msra.mxu0 %v800_v30  ;;  %1121 = vmatprep.mubr.msk.bf16.mxu0 %vm1188_vm0, %v1187_v1 }
 0x3b2   : > { %v1176_v31 = vpop.eup %1175 }
 0x3b3   : > { %v792_v32 = vmul.f32 %v1176_v31, %v1168_v8 }
 0x3b5   : > { %v793_v33 = vpack.c.bf16 %v792_v32, %v792_v32 }
 0x3b8   : > { %1122 = vmatmul.mubr.msk.bf16.vlgmr.msra.gmra.mrb[16].mxu0 %vm396_vm2, %v793_v33 }
 0x456   : > { %v500_v34 = vpop.f32.mrb[4].mxu0 }
 0x457   : > { %v1087_v35 = vpop.f32.mrb[5].mxu0 }
 0x458   : > { %v503_v36 = vpop.f32.mrb[6].mxu0 }
 0x459   : > { %v1088_v37 = vpop.f32.mrb[7].mxu0 }
 0x45e   : > { %v612_v38 = vpop.f32.mrb[8].mxu0 }
 0x45f   : > { %843 = vrot.lane.b32.xlu1 %v612_v38, %s1200_s12  ;;  %v1099_v39 = vpop.f32.mrb[9].mxu0 }
 0x460   : > { %v615_v40 = vpop.f32.mrb[10].mxu0 }
 0x461   : > { %v1100_v41 = vpop.f32.mrb[11].mxu0 }
 0x483   : > { %v724_v44 = vpop.f32.mrb[12].mxu0 }
 0x484   : > { %847 = vrot.lane.b32.xlu0 %v724_v44, %s1201_s17  ;;  %v1111_v45 = vpop.f32.mrb[13].mxu0 }
 0x485   : > { %v727_v46 = vpop.f32.mrb[14].mxu0 }
 0x486   : > { %v1112_v47 = vpop.f32.mrb[15].mxu0 }
 0x48b   : > { %v836_v48 = vpop.f32.mrb[16].mxu0 }
 0x48c   : > { %851 = vrot.lane.b32.xlu1 %v836_v48, %s1202_s18  ;;  %v1123_v49 = vpop.f32.mrb[17].mxu0 }
 0x48d   : > { %v839_v50 = vpop.f32.mrb[18].mxu0 }
 0x48e   : > { %v1124_v51 = vpop.f32.mrb[19].mxu0 }
 0x4d1   : > { %v844_v52 = vpop.permute.xlu1 %843 }
 0x4d2   : > { %v854_v53 = vsel %vm396_vm2, %v500_v34, %v844_v52 }
 0x4f6   : > { %v848_v1 = vpop.permute.xlu0 %847 }
 0x4f7   : > { %v856_v54 = vsel %vm855_vm4, %v854_v53, %v848_v1 }
 0x4fe   : > { %v852_v55 = vpop.permute.xlu1 %851 }
 0x4ff   : > { %v858_v56 = vsel %vm857_vm5, %v856_v54, %v852_v55 }
 0x500   : > { %v859_v57 = vpack.c.bf16 %v858_v56, %v858_v56 }
 0x502   : > { %1130 = vmatmul.mubr.msk.bf16.vlgmr.msra.gmra.mrb[16].mxu1 %vm341_vm1, %v859_v57 }
 0x5d5   : > { %v920_v59 = vpop.f32.mrb[16].mxu1 }
 0x5d6   : > { %v921_v60 = vadd.f32 %v1039_v58, %v920_v59  ;;  %v1131_v61 = vpop.f32.mrb[17].mxu1 }
 0x5d7   : > { %v923_v62 = vpop.f32.mrb[18].mxu1 }
 0x5d8   : > { %v1132_v63 = vpop.f32.mrb[19].mxu1  ;;  %v926_v0 = vadd.f32 %v921_v60, %v1278_v3  ;;  %v1043_v3 = vld [vmem:[%s1387_s6] ss:$0 sm:$0xff] }
 0x5da   : > { %v929_v2 = vsel %vm341_vm1, %v926_v0, 0.0 }
 0x5db   : > { %930 = vadd.xlane.f32.xlu0 %v929_v2 }
 0x668   : > { %v931_v4 = vpop.xlane.xlu0 %930 }
 0x669   : > { %v932_v5 = vmul.f32 0.03125, %v931_v4 }
 0x66b   : > { %v933_v6 = vsub.f32 %v926_v0, %v932_v5 }
 0x66d   : > { %v934_v7 = vmul.f32 %v933_v6, %v933_v6 }
 0x66f   : > { %v935_v8 = vsel %vm341_vm1, %v934_v7, 0.0 }
 0x670   : > { %936 = vadd.xlane.f32.xlu1 %v935_v8 }
 0x6fd   : > { %v937_v9 = vpop.xlane.xlu1 %936 }
 0x6fe   : > { %v938_v11 = vmul.f32 0.03125, %v937_v9 }
 0x700   : > { %v939_v12 = vadd.f32 1e-05, %v938_v11 }
 0x702   : > { %1177 = vrsqrt.f32 %v939_v12 }
 0x70c   : > { %v1178_v13 = vpop.eup %1177 }
 0x70d   : > { %v941_v14 = vmul.f32 %v1178_v13, %v933_v6 }
 0x70f   : > { %v948_v16 = vmul.f32 %v1043_v3, %v941_v14 }
 0x711   : > { %v955_v17 = vadd.f32 %v1044_v15, %v948_v16 }
 0x713   : > { %956 = vst.msk [vmem:[%s314_s29] sm:$0xff] %vm341_vm1, %v955_v17 }
 0x714 PF: > { %s18_s27 = sadd.s32 1, %s1185_s27  }
 0x715   : > { %p15_p4 = scmp.ge.s32.totalorder %s18_s27, 4  }
 0x717   :  { %17 = sbr.rel (!%p15_p4) target bundleno = 1 (0x1), region = 85 }

</bundles_post_ra>
